<compile_context>
chip_gen: v6e
topology: v6e:2x2x1
jax: 0.10.0
libtpu: 0.0.40
codegen_flags: <defaults>
</compile_context>

<pallas_src>
import jax
import jax.numpy as jnp
from jax.experimental import pallas as pl
from jax.experimental.pallas import tpu as pltpu


# ------------------------------ Pallas kernel ------------------------------

def _basic_block_kernel(x_ref, s1_ref, t1_ref, w1_ref, b1_ref, a1_ref,
                        s2_ref, t2_ref, w2_ref, b2_ref, a2_ref, o_ref):
    """Whole BasicBlock forward for one batch element.

    x_ref  : (1, Ho, Wo, 4*Cin) f32   space-to-depth input
    s1/t1  : (1, 4*Cin)  f32          folded bn1 scale/shift (tiled to s2d layout)
    w1     : (16*Cin, Cout) bf16      conv1 repacked as a 2x2 conv over s2d(x),
                                      bn_add1 scale folded in
    b1     : (1, Cout) f32            conv1 bias folded with bn_add1
    a1     : (1, Cout) f32            PReLU1 per-channel slope
    s2/t2  : (1, Cout) f32            folded bn2 scale/shift
    w2     : (9*Cout, Cout) bf16      conv2 im2col weight, bn_add2 folded in
    b2, a2 : (1, Cout) f32
    o_ref  : (1, Ho, Wo, Cout) f32
    """
    x = x_ref[0]                                     # (Ho, Wo, 4*Cin) f32
    ho, wo, c4 = x.shape
    cin = c4 // 4

    # ---- stage 1 prologue: folded BN1 + ReLU (conv padding handled as exact zeros)
    y = jnp.maximum(x * s1_ref[...] + t1_ref[...], 0.0)        # (Ho, Wo, 4*Cin)

    # shortcut = MaxPool2d(2,2)(x) == max over the 4 space-to-depth groups of raw x
    mp = jnp.maximum(jnp.maximum(x[..., 0 * cin:1 * cin], x[..., 1 * cin:2 * cin]),
                     jnp.maximum(x[..., 2 * cin:3 * cin], x[..., 3 * cin:4 * cin]))
    mp2d = mp.reshape(ho * wo, cin)

    # conv1 (3x3, stride 2, pad 1) == stride-1 2x2 conv over s2d(y) with one zero
    # block of padding at the top/left; build the 4 taps as contiguous slices.
    yp = jnp.concatenate([jnp.zeros((1, wo, c4), y.dtype), y], axis=0)
    yp = jnp.concatenate([jnp.zeros((ho + 1, 1, c4), y.dtype), yp], axis=1)
    taps1 = [yp[bi:bi + ho, bj:bj + wo, :] for bi in range(2) for bj in range(2)]
    p1 = jnp.concatenate(taps1, axis=-1).reshape(ho * wo, 4 * c4)

    acc1 = jnp.dot(p1.astype(jnp.bfloat16), w1_ref[...],
                   preferred_element_type=jnp.float32)         # (Ho*Wo, Cout)
    acc1 = acc1 + b1_ref[...]                                  # conv1 bias + bn_add1
    # short_cut = cat([maxpool(x), 0 * maxpool(x)], channel): zeros never touch HBM
    acc1 = acc1 + jnp.concatenate([mp2d, jnp.zeros_like(mp2d)], axis=-1)
    add1 = jnp.where(acc1 >= 0.0, acc1, a1_ref[...] * acc1)    # PReLU1
    cout = add1.shape[-1]

    # ---- stage 2: folded BN2 + ReLU, conv2 (3x3, stride 1, pad 1), residual, PReLU2
    z = jnp.maximum(add1 * s2_ref[...] + t2_ref[...], 0.0)
    z = z.reshape(ho, wo, cout)
    zrow = jnp.zeros((1, wo, cout), z.dtype)
    zp = jnp.concatenate([zrow, z, zrow], axis=0)              # (Ho+2, Wo, Cout)
    zcol = jnp.zeros((ho + 2, 1, cout), z.dtype)
    zp = jnp.concatenate([zcol, zp, zcol], axis=1)             # (Ho+2, Wo+2, Cout)
    taps2 = [zp[dy:dy + ho, dx:dx + wo, :] for dy in range(3) for dx in range(3)]
    p2 = jnp.concatenate(taps2, axis=-1).reshape(ho * wo, 9 * cout)

    acc2 = jnp.dot(p2.astype(jnp.bfloat16), w2_ref[...],
                   preferred_element_type=jnp.float32)
    acc2 = acc2 + b2_ref[...]                                  # conv2 bias + bn_add2
    acc2 = acc2 + add1                                         # residual add
    out = jnp.where(acc2 >= 0.0, acc2, a2_ref[...] * acc2)     # PReLU2

    o_ref[...] = out.reshape(1, ho, wo, cout).astype(o_ref.dtype)


# --------------------------- pallas_call wrapper ---------------------------

def _basic_block_pallas(xs2d, p):
    n, ho, wo, c4 = xs2d.shape
    cout = p["conv1_w"].shape[1]

    def const2d(arr):
        return pl.BlockSpec(arr.shape, lambda b: (0, 0))

    return pl.pallas_call(
        _basic_block_kernel,
        out_shape=jax.ShapeDtypeStruct((n, ho, wo, cout), jnp.float32),
        grid=(n,),
        in_specs=[
            pl.BlockSpec((1, ho, wo, c4), lambda b: (b, 0, 0, 0)),
            const2d(p["bn1_scale"]), const2d(p["bn1_shift"]),
            const2d(p["conv1_w"]), const2d(p["conv1_b"]), const2d(p["prelu1"]),
            const2d(p["bn2_scale"]), const2d(p["bn2_shift"]),
            const2d(p["conv2_w"]), const2d(p["conv2_b"]), const2d(p["prelu2"]),
        ],
        out_specs=pl.BlockSpec((1, ho, wo, cout), lambda b: (b, 0, 0, 0)),
        compiler_params=pltpu.CompilerParams(
            dimension_semantics=("parallel",)),
    )(xs2d,
      p["bn1_scale"], p["bn1_shift"], p["conv1_w"], p["conv1_b"], p["prelu1"],
      p["bn2_scale"], p["bn2_shift"], p["conv2_w"], p["conv2_b"], p["prelu2"])


# ------------------------- parameter folding / packing -------------------------

def _fold_bn(gamma, beta, mean, var, eps=1e-5):
    scale = gamma / jnp.sqrt(var + eps)
    shift = beta - mean * scale
    return scale, shift


def _pack_conv1(w_oihw, bias, bn_scale, bn_shift):
    """conv1 (3x3, stride 2) repacked as a 2x2 conv over space-to-depth input.

    Patch channel layout is ((bi,bj),(ry,rx),cin); weight row (bi,bj,ry,rx,c) maps
    to the original tap (dy, dx) = (2*bi+ry-1, 2*bj+rx-1), zero if out of range.
    bn_add1 scale is folded into the columns; bias' = bias*scale + shift.
    """
    cout, cin = w_oihw.shape[0], w_oihw.shape[1]
    w_hwio = jnp.transpose(w_oihw, (2, 3, 1, 0))               # (3, 3, Cin, Cout)
    rows = []
    for bi in range(2):
        for bj in range(2):
            for ry in range(2):
                for rx in range(2):
                    dy, dx = 2 * bi + ry - 1, 2 * bj + rx - 1
                    if 0 <= dy <= 2 and 0 <= dx <= 2:
                        rows.append(w_hwio[dy, dx])
                    else:
                        rows.append(jnp.zeros((cin, cout), w_hwio.dtype))
    wmat = jnp.concatenate(rows, axis=0) * bn_scale[None, :]    # (16*Cin, Cout)
    bfold = bias * bn_scale + bn_shift
    return wmat.astype(jnp.bfloat16), bfold.reshape(1, cout).astype(jnp.float32)


def _pack_conv2(w_oihw, bias, bn_scale, bn_shift):
    cout, cin = w_oihw.shape[0], w_oihw.shape[1]
    wmat = jnp.transpose(w_oihw, (2, 3, 1, 0)).reshape(9 * cin, cout)
    wmat = wmat * bn_scale[None, :]
    bfold = bias * bn_scale + bn_shift
    return wmat.astype(jnp.bfloat16), bfold.reshape(1, cout).astype(jnp.float32)


def init_raw_params(key, cin, cout):
    """Deterministic synthetic parameters (shapes match the PyTorch module)."""
    ks = jax.random.split(key, 8)

    def bn_params(k, c):
        k1, k2, k3, k4 = jax.random.split(k, 4)
        gamma = jax.random.uniform(k1, (c,), minval=0.5, maxval=1.5)
        beta = 0.1 * jax.random.normal(k2, (c,))
        mean = 0.1 * jax.random.normal(k3, (c,))
        var = jax.random.uniform(k4, (c,), minval=0.5, maxval=1.5)
        return (gamma, beta, mean, var)

    return {
        "bn1": bn_params(ks[0], cin),
        "bn_add1": bn_params(ks[1], cout),
        "bn2": bn_params(ks[2], cout),
        "bn_add2": bn_params(ks[3], cout),
        "w1": 0.1 * jax.random.normal(ks[4], (cout, cin, 3, 3)),   # OIHW
        "w2": 0.1 * jax.random.normal(ks[5], (cout, cout, 3, 3)),
        "b1": 0.1 * jax.random.normal(ks[6], (cout,)),
        "b2": 0.1 * jax.random.normal(ks[7], (cout,)),
        "a1": jnp.full((cout,), 0.25, jnp.float32),                # PReLU default
        "a2": jnp.full((cout,), 0.25, jnp.float32),
    }


def pack_params(raw):
    cout, cin = raw["w1"].shape[0], raw["w1"].shape[1]
    s1, t1 = _fold_bn(*raw["bn1"])
    sa1, ta1 = _fold_bn(*raw["bn_add1"])
    s2, t2 = _fold_bn(*raw["bn2"])
    sa2, ta2 = _fold_bn(*raw["bn_add2"])
    w1p, b1p = _pack_conv1(raw["w1"], raw["b1"], sa1, ta1)
    w2p, b2p = _pack_conv2(raw["w2"], raw["b2"], sa2, ta2)
    return {
        # bn1 affine tiled x4 to match the s2d channel layout ((ry,rx),c).
        "bn1_scale": jnp.tile(s1, 4).reshape(1, 4 * cin).astype(jnp.float32),
        "bn1_shift": jnp.tile(t1, 4).reshape(1, 4 * cin).astype(jnp.float32),
        "bn2_scale": s2.reshape(1, cout).astype(jnp.float32),
        "bn2_shift": t2.reshape(1, cout).astype(jnp.float32),
        "conv1_w": w1p, "conv1_b": b1p,
        "conv2_w": w2p, "conv2_b": b2p,
        "prelu1": raw["a1"].reshape(1, cout).astype(jnp.float32),
        "prelu2": raw["a2"].reshape(1, cout).astype(jnp.float32),
    }


# --------------------------------- forward ---------------------------------

def basic_block_forward(x_nchw, p):
    """BasicBlock(cin, cout, stride=2, has_branch=True, ActiveFunction=ReLU)."""
    x = jnp.transpose(x_nchw, (0, 2, 3, 1)).astype(jnp.float32)   # NCHW -> NHWC
    n, h, w, cin = x.shape
    cout = p["conv1_w"].shape[1]
    assert cout == 2 * cin and h % 2 == 0 and w % 2 == 0, \
        "has_branch=True path requires cout == 2*cin and even spatial dims"
    ho, wo = h // 2, w // 2
    # space-to-depth (pure layout plumbing, one pass over x): channel = (ry, rx, c)
    xs2d = (x.reshape(n, ho, 2, wo, 2, cin)
             .transpose(0, 1, 3, 2, 4, 5)
             .reshape(n, ho, wo, 4 * cin))
    out = _basic_block_pallas(xs2d, p)                            # (n, ho, wo, cout)
    return jnp.transpose(out, (0, 3, 1, 2))                       # NHWC -> NCHW


# ------------------------- pure-JAX reference (f32) -------------------------

def _reference_forward(x, raw):
    def bn(v, prm, eps=1e-5):
        g, b, m, var = prm
        inv = g / jnp.sqrt(var + eps)
        return (v - m[None, :, None, None]) * inv[None, :, None, None] \
            + b[None, :, None, None]

    def conv(v, w, b, stride):
        o = jax.lax.conv_general_dilated(
            v, w, window_strides=(stride, stride), padding=((1, 1), (1, 1)),
            dimension_numbers=("NCHW", "OIHW", "NCHW"))
        return o + b[None, :, None, None]

    def prelu(v, a):
        return jnp.where(v >= 0, v, a[None, :, None, None] * v)

    n, c, h, w = x.shape
    out = jnp.maximum(bn(x, raw["bn1"]), 0.0)
    mp = x.reshape(n, c, h // 2, 2, w // 2, 2).max(axis=(3, 5))
    sc = jnp.concatenate([mp, jnp.zeros_like(mp)], axis=1)
    out = conv(out, raw["w1"], raw["b1"], 2)
    out = bn(out, raw["bn_add1"]) + sc
    out = prelu(out, raw["a1"])
    add = out
    out = jnp.maximum(bn(out, raw["bn2"]), 0.0)
    out = conv(out, raw["w2"], raw["b2"], 1)
    out = bn(out, raw["bn_add2"]) + add
    return prelu(out, raw["a2"])


if __name__ == "__main__":
    key = jax.random.PRNGKey(0)
    kx, kp = jax.random.split(key)
    cin, cout = 4, 8                     # has_branch=True implies cout == 2*cin, stride=2
    x = jax.random.normal(kx, (2, cin, 16, 16), dtype=jnp.float32)   # NCHW like PyTorch

    raw = init_raw_params(kp, cin, cout)
    params = pack_params(raw)

    fwd = jax.jit(basic_block_forward)
    out = jax.block_until_ready(fwd(x, params))
    assert out.shape == (2, cout, 8, 8), out.shape
    assert bool(jnp.all(jnp.isfinite(out)))

    # Sanity check against a pure-JAX f32 reference (kernel uses bf16 MXU operands,
    # so tolerance is loose but far below the error of any structural bug).
    ref = _reference_forward(x, raw)
    err = float(jnp.max(jnp.abs(out - ref)))
    scale = float(jnp.max(jnp.abs(ref))) + 1e-6
    assert err <= 0.05 * scale + 0.1, f"mismatch: max abs err {err} (ref scale {scale})"

    print("KERNEL_OK")
</pallas_src>

<mosaic_0001>
module attributes {stable_mosaic.version = 11 : i64} {
  func.func @_basic_block_kernel(%arg0: i32, %arg1: memref<1x8x8x16xf32, #tpu.memory_space<vmem>>, %arg2: memref<1x16xf32, #tpu.memory_space<vmem>>, %arg3: memref<1x16xf32, #tpu.memory_space<vmem>>, %arg4: memref<64x8xbf16, #tpu.memory_space<vmem>>, %arg5: memref<1x8xf32, #tpu.memory_space<vmem>>, %arg6: memref<1x8xf32, #tpu.memory_space<vmem>>, %arg7: memref<1x8xf32, #tpu.memory_space<vmem>>, %arg8: memref<1x8xf32, #tpu.memory_space<vmem>>, %arg9: memref<72x8xbf16, #tpu.memory_space<vmem>>, %arg10: memref<1x8xf32, #tpu.memory_space<vmem>>, %arg11: memref<1x8xf32, #tpu.memory_space<vmem>>, %arg12: memref<1x8x8x8xf32, #tpu.memory_space<vmem>>) attributes {dimension_semantics = [#tpu.dimension_semantics<parallel>], iteration_bounds = array<i64: 2>, scalar_prefetch = 0 : i64, scratch_operands = 0 : i64, tpu.core_type = #tpu.core_type<tc>, window_params = [{transform_indices = @transform_0, window_bounds = array<i64: 1, 8, 8, 16>}, {pipeline_mode = #tpu.pipeline_mode<synchronous>, transform_indices = @transform_1, window_bounds = array<i64: 1, 16>}, {pipeline_mode = #tpu.pipeline_mode<synchronous>, transform_indices = @transform_2, window_bounds = array<i64: 1, 16>}, {pipeline_mode = #tpu.pipeline_mode<synchronous>, transform_indices = @transform_3, window_bounds = array<i64: 64, 8>}, {pipeline_mode = #tpu.pipeline_mode<synchronous>, transform_indices = @transform_4, window_bounds = array<i64: 1, 8>}, {pipeline_mode = #tpu.pipeline_mode<synchronous>, transform_indices = @transform_5, window_bounds = array<i64: 1, 8>}, {pipeline_mode = #tpu.pipeline_mode<synchronous>, transform_indices = @transform_6, window_bounds = array<i64: 1, 8>}, {pipeline_mode = #tpu.pipeline_mode<synchronous>, transform_indices = @transform_7, window_bounds = array<i64: 1, 8>}, {pipeline_mode = #tpu.pipeline_mode<synchronous>, transform_indices = @transform_8, window_bounds = array<i64: 72, 8>}, {pipeline_mode = #tpu.pipeline_mode<synchronous>, transform_indices = @transform_9, window_bounds = array<i64: 1, 8>}, {pipeline_mode = #tpu.pipeline_mode<synchronous>, transform_indices = @transform_10, window_bounds = array<i64: 1, 8>}, {transform_indices = @transform_11, window_bounds = array<i64: 1, 8, 8, 8>}]} {
    %c0 = arith.constant 0 : index
    %c0_0 = arith.constant 0 : index
    %c0_1 = arith.constant 0 : index
    %c0_2 = arith.constant 0 : index
    %0 = vector.load %arg1[%c0, %c0_0, %c0_1, %c0_2] : memref<1x8x8x16xf32, #tpu.memory_space<vmem>>, vector<1x8x8x16xf32>
    %1 = vector.shape_cast %0 : vector<1x8x8x16xf32> to vector<8x8x16xf32>
    %c0_3 = arith.constant 0 : index
    %c0_4 = arith.constant 0 : index
    %2 = vector.load %arg2[%c0_3, %c0_4] : memref<1x16xf32, #tpu.memory_space<vmem>>, vector<1x16xf32>
    %3 = vector.shape_cast %2 : vector<1x16xf32> to vector<1x1x16xf32>
    %4 = vector.broadcast %3 : vector<1x1x16xf32> to vector<8x8x16xf32>
    %5 = arith.mulf %1, %4 : vector<8x8x16xf32>
    %c0_5 = arith.constant 0 : index
    %c0_6 = arith.constant 0 : index
    %6 = vector.load %arg3[%c0_5, %c0_6] : memref<1x16xf32, #tpu.memory_space<vmem>>, vector<1x16xf32>
    %7 = vector.shape_cast %6 : vector<1x16xf32> to vector<1x1x16xf32>
    %8 = vector.broadcast %7 : vector<1x1x16xf32> to vector<8x8x16xf32>
    %9 = arith.addf %5, %8 : vector<8x8x16xf32>
    %cst = arith.constant 0.000000e+00 : f32
    %10 = vector.broadcast %cst : f32 to vector<8x8x16xf32>
    %11 = arith.maximumf %9, %10 : vector<8x8x16xf32>
    %12 = vector.extract_strided_slice %1 {offsets = [0, 0, 0], sizes = [8, 8, 4], strides = [1, 1, 1]} : vector<8x8x16xf32> to vector<8x8x4xf32>
    %13 = vector.extract_strided_slice %1 {offsets = [0, 0, 4], sizes = [8, 8, 4], strides = [1, 1, 1]} : vector<8x8x16xf32> to vector<8x8x4xf32>
    %14 = arith.maximumf %12, %13 : vector<8x8x4xf32>
    %15 = vector.extract_strided_slice %1 {offsets = [0, 0, 8], sizes = [8, 8, 4], strides = [1, 1, 1]} : vector<8x8x16xf32> to vector<8x8x4xf32>
    %16 = vector.extract_strided_slice %1 {offsets = [0, 0, 12], sizes = [8, 8, 4], strides = [1, 1, 1]} : vector<8x8x16xf32> to vector<8x8x4xf32>
    %17 = arith.maximumf %15, %16 : vector<8x8x4xf32>
    %18 = arith.maximumf %14, %17 : vector<8x8x4xf32>
    %19 = vector.shape_cast %18 : vector<8x8x4xf32> to vector<64x4xf32>
    %cst_7 = arith.constant 0.000000e+00 : f32
    %20 = vector.broadcast %cst_7 : f32 to vector<1x8x16xf32>
    %21 = tpu.concatenate %20, %11 in 0 : vector<1x8x16xf32>, vector<8x8x16xf32> -> vector<9x8x16xf32>
    %cst_8 = arith.constant 0.000000e+00 : f32
    %22 = vector.broadcast %cst_8 : f32 to vector<9x1x16xf32>
    %23 = tpu.concatenate %22, %21 in 1 : vector<9x1x16xf32>, vector<9x8x16xf32> -> vector<9x9x16xf32>
    %24 = vector.extract_strided_slice %23 {offsets = [0, 0, 0], sizes = [8, 8, 16], strides = [1, 1, 1]} : vector<9x9x16xf32> to vector<8x8x16xf32>
    %25 = vector.extract_strided_slice %23 {offsets = [0, 1, 0], sizes = [8, 8, 16], strides = [1, 1, 1]} : vector<9x9x16xf32> to vector<8x8x16xf32>
    %26 = vector.extract_strided_slice %23 {offsets = [1, 0, 0], sizes = [8, 8, 16], strides = [1, 1, 1]} : vector<9x9x16xf32> to vector<8x8x16xf32>
    %27 = vector.extract_strided_slice %23 {offsets = [1, 1, 0], sizes = [8, 8, 16], strides = [1, 1, 1]} : vector<9x9x16xf32> to vector<8x8x16xf32>
    %28 = tpu.concatenate %24, %25, %26, %27 in 2 : vector<8x8x16xf32>, vector<8x8x16xf32>, vector<8x8x16xf32>, vector<8x8x16xf32> -> vector<8x8x64xf32>
    %29 = vector.shape_cast %28 : vector<8x8x64xf32> to vector<64x64xf32>
    %30 = arith.truncf %29 : vector<64x64xf32> to vector<64x64xbf16>
    %c0_9 = arith.constant 0 : index
    %c0_10 = arith.constant 0 : index
    %31 = vector.load %arg4[%c0_9, %c0_10] : memref<64x8xbf16, #tpu.memory_space<vmem>>, vector<64x8xbf16>
    %cst_11 = arith.constant dense<0.000000e+00> : vector<64x8xf32>
    %32 = tpu.matmul %30, %31, %cst_11 {dimension_numbers = #tpu.dot_dimension_numbers<[1], [0], [0], [1], [0, 0, 1, 1], [], []>} : vector<64x64xbf16>, vector<64x8xbf16>, vector<64x8xf32> -> vector<64x8xf32>
    %c0_12 = arith.constant 0 : index
    %c0_13 = arith.constant 0 : index
    %33 = vector.load %arg5[%c0_12, %c0_13] : memref<1x8xf32, #tpu.memory_space<vmem>>, vector<1x8xf32>
    %34 = vector.broadcast %33 : vector<1x8xf32> to vector<64x8xf32>
    %35 = arith.addf %32, %34 : vector<64x8xf32>
    %cst_14 = arith.constant 0.000000e+00 : f32
    %36 = vector.broadcast %cst_14 : f32 to vector<64x4xf32>
    %37 = tpu.concatenate %19, %36 in 1 : vector<64x4xf32>, vector<64x4xf32> -> vector<64x8xf32>
    %38 = arith.addf %35, %37 : vector<64x8xf32>
    %cst_15 = arith.constant 0.000000e+00 : f32
    %39 = vector.broadcast %cst_15 : f32 to vector<64x8xf32>
    %40 = arith.cmpf oge, %38, %39 : vector<64x8xf32>
    %c0_16 = arith.constant 0 : index
    %c0_17 = arith.constant 0 : index
    %41 = vector.load %arg6[%c0_16, %c0_17] : memref<1x8xf32, #tpu.memory_space<vmem>>, vector<1x8xf32>
    %42 = vector.broadcast %41 : vector<1x8xf32> to vector<64x8xf32>
    %43 = arith.mulf %42, %38 : vector<64x8xf32>
    %44 = arith.select %40, %38, %43 : vector<64x8xi1>, vector<64x8xf32>
    %c0_18 = arith.constant 0 : index
    %c0_19 = arith.constant 0 : index
    %45 = vector.load %arg7[%c0_18, %c0_19] : memref<1x8xf32, #tpu.memory_space<vmem>>, vector<1x8xf32>
    %46 = vector.broadcast %45 : vector<1x8xf32> to vector<64x8xf32>
    %47 = arith.mulf %44, %46 : vector<64x8xf32>
    %c0_20 = arith.constant 0 : index
    %c0_21 = arith.constant 0 : index
    %48 = vector.load %arg8[%c0_20, %c0_21] : memref<1x8xf32, #tpu.memory_space<vmem>>, vector<1x8xf32>
    %49 = vector.broadcast %48 : vector<1x8xf32> to vector<64x8xf32>
    %50 = arith.addf %47, %49 : vector<64x8xf32>
    %cst_22 = arith.constant 0.000000e+00 : f32
    %51 = vector.broadcast %cst_22 : f32 to vector<64x8xf32>
    %52 = arith.maximumf %50, %51 : vector<64x8xf32>
    %53 = vector.shape_cast %52 : vector<64x8xf32> to vector<8x8x8xf32>
    %cst_23 = arith.constant 0.000000e+00 : f32
    %54 = vector.broadcast %cst_23 : f32 to vector<1x8x8xf32>
    %55 = tpu.concatenate %54, %53, %54 in 0 : vector<1x8x8xf32>, vector<8x8x8xf32>, vector<1x8x8xf32> -> vector<10x8x8xf32>
    %cst_24 = arith.constant 0.000000e+00 : f32
    %56 = vector.broadcast %cst_24 : f32 to vector<10x1x8xf32>
    %57 = tpu.concatenate %56, %55, %56 in 1 : vector<10x1x8xf32>, vector<10x8x8xf32>, vector<10x1x8xf32> -> vector<10x10x8xf32>
    %58 = vector.extract_strided_slice %57 {offsets = [0, 0, 0], sizes = [8, 8, 8], strides = [1, 1, 1]} : vector<10x10x8xf32> to vector<8x8x8xf32>
    %59 = vector.extract_strided_slice %57 {offsets = [0, 1, 0], sizes = [8, 8, 8], strides = [1, 1, 1]} : vector<10x10x8xf32> to vector<8x8x8xf32>
    %60 = vector.extract_strided_slice %57 {offsets = [0, 2, 0], sizes = [8, 8, 8], strides = [1, 1, 1]} : vector<10x10x8xf32> to vector<8x8x8xf32>
    %61 = vector.extract_strided_slice %57 {offsets = [1, 0, 0], sizes = [8, 8, 8], strides = [1, 1, 1]} : vector<10x10x8xf32> to vector<8x8x8xf32>
    %62 = vector.extract_strided_slice %57 {offsets = [1, 1, 0], sizes = [8, 8, 8], strides = [1, 1, 1]} : vector<10x10x8xf32> to vector<8x8x8xf32>
    %63 = vector.extract_strided_slice %57 {offsets = [1, 2, 0], sizes = [8, 8, 8], strides = [1, 1, 1]} : vector<10x10x8xf32> to vector<8x8x8xf32>
    %64 = vector.extract_strided_slice %57 {offsets = [2, 0, 0], sizes = [8, 8, 8], strides = [1, 1, 1]} : vector<10x10x8xf32> to vector<8x8x8xf32>
    %65 = vector.extract_strided_slice %57 {offsets = [2, 1, 0], sizes = [8, 8, 8], strides = [1, 1, 1]} : vector<10x10x8xf32> to vector<8x8x8xf32>
    %66 = vector.extract_strided_slice %57 {offsets = [2, 2, 0], sizes = [8, 8, 8], strides = [1, 1, 1]} : vector<10x10x8xf32> to vector<8x8x8xf32>
    %67 = tpu.concatenate %58, %59, %60, %61, %62, %63, %64, %65, %66 in 2 : vector<8x8x8xf32>, vector<8x8x8xf32>, vector<8x8x8xf32>, vector<8x8x8xf32>, vector<8x8x8xf32>, vector<8x8x8xf32>, vector<8x8x8xf32>, vector<8x8x8xf32>, vector<8x8x8xf32> -> vector<8x8x72xf32>
    %68 = vector.shape_cast %67 : vector<8x8x72xf32> to vector<64x72xf32>
    %69 = arith.truncf %68 : vector<64x72xf32> to vector<64x72xbf16>
    %c0_25 = arith.constant 0 : index
    %c0_26 = arith.constant 0 : index
    %70 = vector.load %arg9[%c0_25, %c0_26] : memref<72x8xbf16, #tpu.memory_space<vmem>>, vector<72x8xbf16>
    %cst_27 = arith.constant dense<0.000000e+00> : vector<64x8xf32>
    %71 = tpu.matmul %69, %70, %cst_27 {dimension_numbers = #tpu.dot_dimension_numbers<[1], [0], [0], [1], [0, 0, 1, 1], [], []>} : vector<64x72xbf16>, vector<72x8xbf16>, vector<64x8xf32> -> vector<64x8xf32>
    %c0_28 = arith.constant 0 : index
    %c0_29 = arith.constant 0 : index
    %72 = vector.load %arg10[%c0_28, %c0_29] : memref<1x8xf32, #tpu.memory_space<vmem>>, vector<1x8xf32>
    %73 = vector.broadcast %72 : vector<1x8xf32> to vector<64x8xf32>
    %74 = arith.addf %71, %73 : vector<64x8xf32>
    %75 = arith.addf %74, %44 : vector<64x8xf32>
    %cst_30 = arith.constant 0.000000e+00 : f32
    %76 = vector.broadcast %cst_30 : f32 to vector<64x8xf32>
    %77 = arith.cmpf oge, %75, %76 : vector<64x8xf32>
    %c0_31 = arith.constant 0 : index
    %c0_32 = arith.constant 0 : index
    %78 = vector.load %arg11[%c0_31, %c0_32] : memref<1x8xf32, #tpu.memory_space<vmem>>, vector<1x8xf32>
    %79 = vector.broadcast %78 : vector<1x8xf32> to vector<64x8xf32>
    %80 = arith.mulf %79, %75 : vector<64x8xf32>
    %81 = arith.select %77, %75, %80 : vector<64x8xi1>, vector<64x8xf32>
    %82 = vector.shape_cast %81 : vector<64x8xf32> to vector<1x8x8x8xf32>
    %c0_33 = arith.constant 0 : index
    %c0_34 = arith.constant 0 : index
    %c0_35 = arith.constant 0 : index
    %c0_36 = arith.constant 0 : index
    %83 = vector.load %arg12[%c0_33, %c0_34, %c0_35, %c0_36] : memref<1x8x8x8xf32, #tpu.memory_space<vmem>>, vector<1x8x8x8xf32>
    tpu.vector_store %arg12[%c0_33, %c0_34, %c0_35, %c0_36], %82 {strides = array<i32>} : memref<1x8x8x8xf32, #tpu.memory_space<vmem>>, vector<1x8x8x8xf32>,
    return
  }
  func.func @transform_0(%arg0: i32) -> (i32, i32, i32, i32) {
    %c0_i32 = arith.constant 0 : i32
    %c0_i32_0 = arith.constant 0 : i32
    %c0_i32_1 = arith.constant 0 : i32
    %c0_i32_2 = arith.constant 0 : i32
    return %arg0, %c0_i32, %c0_i32_0, %c0_i32_1 : i32, i32, i32, i32
  }
  func.func @transform_1(%arg0: i32) -> (i32, i32) {
    %c0_i32 = arith.constant 0 : i32
    %c0_i32_0 = arith.constant 0 : i32
    %c0_i32_1 = arith.constant 0 : i32
    return %c0_i32, %c0_i32_0 : i32, i32
  }
  func.func @transform_2(%arg0: i32) -> (i32, i32) {
    %c0_i32 = arith.constant 0 : i32
    %c0_i32_0 = arith.constant 0 : i32
    %c0_i32_1 = arith.constant 0 : i32
    return %c0_i32, %c0_i32_0 : i32, i32
  }
  func.func @transform_3(%arg0: i32) -> (i32, i32) {
    %c0_i32 = arith.constant 0 : i32
    %c0_i32_0 = arith.constant 0 : i32
    %c0_i32_1 = arith.constant 0 : i32
    return %c0_i32, %c0_i32_0 : i32, i32
  }
  func.func @transform_4(%arg0: i32) -> (i32, i32) {
    %c0_i32 = arith.constant 0 : i32
    %c0_i32_0 = arith.constant 0 : i32
    %c0_i32_1 = arith.constant 0 : i32
    return %c0_i32, %c0_i32_0 : i32, i32
  }
  func.func @transform_5(%arg0: i32) -> (i32, i32) {
    %c0_i32 = arith.constant 0 : i32
    %c0_i32_0 = arith.constant 0 : i32
    %c0_i32_1 = arith.constant 0 : i32
    return %c0_i32, %c0_i32_0 : i32, i32
  }
  func.func @transform_6(%arg0: i32) -> (i32, i32) {
    %c0_i32 = arith.constant 0 : i32
    %c0_i32_0 = arith.constant 0 : i32
    %c0_i32_1 = arith.constant 0 : i32
    return %c0_i32, %c0_i32_0 : i32, i32
  }
  func.func @transform_7(%arg0: i32) -> (i32, i32) {
    %c0_i32 = arith.constant 0 : i32
    %c0_i32_0 = arith.constant 0 : i32
    %c0_i32_1 = arith.constant 0 : i32
    return %c0_i32, %c0_i32_0 : i32, i32
  }
  func.func @transform_8(%arg0: i32) -> (i32, i32) {
    %c0_i32 = arith.constant 0 : i32
    %c0_i32_0 = arith.constant 0 : i32
    %c0_i32_1 = arith.constant 0 : i32
    return %c0_i32, %c0_i32_0 : i32, i32
  }
  func.func @transform_9(%arg0: i32) -> (i32, i32) {
    %c0_i32 = arith.constant 0 : i32
    %c0_i32_0 = arith.constant 0 : i32
    %c0_i32_1 = arith.constant 0 : i32
    return %c0_i32, %c0_i32_0 : i32, i32
  }
  func.func @transform_10(%arg0: i32) -> (i32, i32) {
    %c0_i32 = arith.constant 0 : i32
    %c0_i32_0 = arith.constant 0 : i32
    %c0_i32_1 = arith.constant 0 : i32
    return %c0_i32, %c0_i32_0 : i32, i32
  }
  func.func @transform_11(%arg0: i32) -> (i32, i32, i32, i32) {
    %c0_i32 = arith.constant 0 : i32
    %c0_i32_0 = arith.constant 0 : i32
    %c0_i32_1 = arith.constant 0 : i32
    %c0_i32_2 = arith.constant 0 : i32
    return %arg0, %c0_i32, %c0_i32_0, %c0_i32_1 : i32, i32, i32, i32
  }
}

</mosaic_0001>

<bundles_post_ra>
// kernel: basic_block_forward.1
= control target key start
LH: loop header
LB: loop body
LE: loop exit
PB: predicated region body
PF: predicated region fallthrough
CT: control target
= control target key end

     0   :  { %s1914_s17 = smov 0   ;;  %s2484_s0 = inlined_call_operand.vmem [shape: f32[2,8,8,16], index: 0, kind: input, shape index: {}]   ;;  %s2485_s1 = inlined_call_operand.vmem [shape: f32[1,16], index: 1, kind: input, shape index: {}]   ;;  %s2486_s2 = inlined_call_operand.vmem [shape: f32[1,16], index: 2, kind: input, shape index: {}]   ;;  %s2487_s3 = inlined_call_operand.vmem [shape: bf16[64,8], index: 3, kind: input, shape index: {}]   ;;  %s2488_s4 = inlined_call_operand.vmem [shape: f32[1,8], index: 4, kind: input, shape index: {}]   ;;  %s2489_s5 = inlined_call_operand.vmem [shape: f32[1,8], index: 5, kind: input, shape index: {}]   ;;  %s2490_s6 = inlined_call_operand.vmem [shape: f32[1,8], index: 6, kind: input, shape index: {}]   ;;  %s2491_s7 = inlined_call_operand.vmem [shape: f32[1,8], index: 7, kind: input, shape index: {}]   ;;  %s2492_s8 = inlined_call_operand.vmem [shape: bf16[72,8], index: 8, kind: input, shape index: {}]   ;;  %s2493_s9 = inlined_call_operand.vmem [shape: f32[1,8], index: 9, kind: input, shape index: {}]   ;;  %s2494_s10 = inlined_call_operand.vmem [shape: f32[1,8], index: 10, kind: input, shape index: {}]   ;;  %s2495_s11 = inlined_call_operand.vmem [shape: f32[2,8,8,8], index: 11, kind: output, shape index: {}]  }
   0x1 LB: > { %s1497_s18 = sadd.s32 4294967295, %s1841_s17   ;;  %p1501_p0 = scmp.ge.s32.totalorder %s1841_s17, 1  ;;  %s1841_s17 = sphi %s1914_s17, %s21_s17  }
   0x2   : > { %p337_p1 = scmp.lt.s32.totalorder %s1841_s17, 3 }
   0x4   : > { %p338_p2 = pnand %p1501_p0, %p337_p1 }
   0x5   : > { %p377_p3 = scmp.lt.s32.totalorder (!%p338_p2), %s1497_s18, 1  ;;  %s1844_s14 = smov (!%p338_p2), 32  }
   0x6   : > { %341 = sbr.rel (%p338_p2) target bundleno = 765 (0x2fd), region = 64  ;;  %s1845_s19 = smov (!%p338_p2), 16  }
   0x7   : > { %s1846_s20 = smov (!%p338_p2), 48   ;;  %s1847_s22 = smov (!%p338_p2), 124  }
   0x8   : > { %s1848_s23 = smov (!%p338_p2), 120   ;;  %s1849_s13 = smov (!%p338_p2), 24  }
   0x9   : > { %s1850_s15 = smov (!%p338_p2), 8   ;;  %s1851_s16 = smov (!%p338_p2), 40  }
   0xa   : > { %s1852_s28 = smov (!%p338_p2), 56   ;;  %s1853_s12 = smov (!%p338_p2), 64  }
   0xb   : > { %vm541_vm0 = vcmask 1040384   ;;  %s2497_s18 = smov (!%p377_p3, %s1497_s18), 1  ;;  %v1843_v0 = vmov 0.0   ;;  %v1506_v2 = vld [vmem:[%s2485_s1] ss:$0 sm:$0xff]  ;;  %vm559_vm1 = vcmask 1046528  }
   0xc   : > { %v1924_v1 = vrot.slane %v1843_v0, 7  ;;  %s1533_s21 = sshll.u32 %s2497_s18, 6  ;;  %v1507_v3 = vld [vmem:[%s2486_s2] ss:$0 sm:$0xff]  ;;  %v1826_v21 = vld [vmem:[%s2487_s3 + $0x18] sm:$0xff]   ;;  %v1827_v34 = vld [vmem:[%s2487_s3 + $0x10] sm:$0xff]  }
   0xd   : > { %s381_s26 = scalar_lea.vmem %s2484_s0, %s1533_s21  ;;  %1552 = vmatprep.subr.bf16.mxu0 %v1826_v21  ;;  %v1828_v48 = vld [vmem:[%s2487_s3 + $0x8] sm:$0xff]   ;;  %v1829_v63 = vld [vmem:[%s2487_s3] sm:$0xff]   ;;  %vm660_vm2 = vcmask 130048   ;;  %vm669_vm3 = vcmask 261120   ;;  %vm678_vm4 = vcmask 392192   ;;  %vm730_vm5 = vcmask 523264   ;;  %s2456_s24 = scalar_lea.vmem %s2495_s11, %s1533_s21 }
   0xe   : > { %v1940_v4 = vsel %vm541_vm0, 0.0, %v1924_v1  ;;  %v1942_v5 = vld [vmem:[%s381_s26 + $0x20] sm:$0xff]  ;;  %v1944_v6 = vld [vmem:[%s381_s26 + $0x28] sm:$0xff]  ;;  %v1953_v12 = vld [vmem:[%s381_s26 + $0x10] sm:$0xff]  ;;  %v561_v14 = vrot.slane %v1924_v1, 1  ;;  %1553 = vmatpush3.bf16.msra.mxu0 %v1826_v21  ;;  %vm808_vm6 = vcmask 31744  }
   0xf   : > { %v1946_v7 = vld [vmem:[%s381_s26] sm:$0xff]  ;;  %v407_v8 = vmul.f32 %v1506_v2, %v1942_v5  ;;  %v408_v9 = vmul.f32 %v1506_v2, %v1944_v6  ;;  %v1950_v10 = vld [vmem:[%s381_s26 + $0x8] sm:$0xff]  ;;  %v1955_v13 = vld [vmem:[%s381_s26 + $0x18] sm:$0xff]  ;;  %v405_v16 = vmul.f32 %v1506_v2, %v1953_v12  ;;  %v560_v18 = vrot.slane %v1940_v4, 1  ;;  %1554 = vmatprep.subr.bf16.mxu0 %v1827_v34 }
  0x10   : > { %v403_v11 = vmul.f32 %v1506_v2, %v1946_v7  ;;  %v404_v15 = vmul.f32 %v1506_v2, %v1950_v10  ;;  %v406_v17 = vmul.f32 %v1506_v2, %v1955_v13  ;;  %v1962_v19 = vld [vmem:[%s381_s26 + $0x30] sm:$0xff]  ;;  %v1964_v20 = vld [vmem:[%s381_s26 + $0x38] sm:$0xff]  ;;  %vm997_vm14 = vcmask 1045504  }
  0x11   : > { %v422_v22 = vadd.f32 %v1507_v3, %v407_v8  ;;  %v423_v23 = vadd.f32 %v1507_v3, %v408_v9  ;;  %v409_v25 = vmul.f32 %v1506_v2, %v1962_v19  ;;  %v420_v27 = vadd.f32 %v1507_v3, %v405_v16 }
  0x12   : > { %v418_v24 = vadd.f32 %v1507_v3, %v403_v11  ;;  %v419_v26 = vadd.f32 %v1507_v3, %v404_v15  ;;  %v421_v28 = vadd.f32 %v1507_v3, %v406_v17  ;;  %v410_v29 = vmul.f32 %v1506_v2, %v1964_v20  ;;  %1555 = vmatpush3.bf16.msra.mxu0 %v1827_v34 }
  0x13   : > { %v430_v30 = vmax.f32 %v422_v22, 0.0  ;;  %v431_v31 = vmax.f32 %v423_v23, 0.0  ;;  %v424_v33 = vadd.f32 %v1507_v3, %v409_v25  ;;  %v428_v36 = vmax.f32 %v420_v27, 0.0  ;;  %1556 = vmatprep.subr.bf16.mxu0 %v1828_v48 }
  0x14   : > { %v426_v32 = vmax.f32 %v418_v24, 0.0  ;;  %v427_v35 = vmax.f32 %v419_v26, 0.0  ;;  %v429_v37 = vmax.f32 %v421_v28, 0.0  ;;  %v425_v38 = vadd.f32 %v1507_v3, %v410_v29 }
  0x15   : > { %v528_v39 = vrot.slane %v430_v30, 7  ;;  %v1974_v40 = vrot.slane %v431_v31, 7  ;;  %v526_v43 = vrot.slane %v428_v36, 7  ;;  %v562_v47 = vsel %vm559_vm1, %v560_v18, %v561_v14 }
  0x16   : > { %v524_v41 = vrot.slane %v426_v32, 7  ;;  %v525_v42 = vrot.slane %v427_v35, 7  ;;  %v527_v44 = vrot.slane %v429_v37, 7  ;;  %v432_v51 = vmax.f32 %v424_v33, 0.0  ;;  %1557 = vmatpush3.bf16.msra.mxu0 %v1828_v48 }
  0x17   : > { %v1977_v45 = vsel %vm541_vm0, 0.0, %v528_v39  ;;  %v1981_v46 = vsel %vm541_vm0, 0.0, %v1974_v40  ;;  %v433_v52 = vmax.f32 %v425_v38, 0.0  ;;  %v2003_v59 = vsel %vm541_vm0, 0.0, %v526_v43  ;;  %1558 = vmatprep.subr.bf16.mxu0 %v1829_v63 }
  0x18   : > { %v1616_v49 = vpack.i.bf16 %v1981_v46, %v1977_v45  ;;  %v1992_v50 = vsel %vm541_vm0, 0.0, %v524_v41  ;;  %v1995_v53 = vsel %vm541_vm0, 0.0, %v525_v42  ;;  %v564_v54 = vrot.slane %v524_v41, 1 }
  0x19   : > { %v567_v55 = vrot.slane %v525_v42, 1  ;;  %v563_v56 = vrot.slane %v1992_v50, 1  ;;  %v566_v57 = vrot.slane %v1995_v53, 1  ;;  %v1606_v58 = vpack.i.bf16 %v1995_v53, %v1992_v50 }
  0x1a   : > { %1617 = vrot.lane.b32.xlu0 %v1616_v49, %s1844_s14  ;;  %v2006_v60 = vsel %vm541_vm0, 0.0, %v527_v44  ;;  %v569_v61 = vrot.slane %v2003_v59, 1  ;;  %v530_v3 = vrot.slane %v432_v51, 7  ;;  %v531_v8 = vrot.slane %v433_v52, 7  ;;  %1559 = vmatpush3.bf16.msra.mxu0 %v1829_v63 }
  0x1b   : > { %v565_v62 = vsel %vm559_vm1, %v563_v56, %v564_v54  ;;  %1607 = vrot.lane.b32.xlu1 %v1606_v58, %s1844_s14  ;;  %v1611_v0 = vpack.i.bf16 %v2006_v60, %v2003_v59  ;;  %v572_v9 = vrot.slane %v2006_v60, 1  ;;  %v568_v11 = vsel %vm559_vm1, %v566_v57, %v567_v55 }
  0x1c   : > { %v1626_v2 = vpack.i.bf16 %v565_v62, %v562_v47  ;;  %v570_v14 = vrot.slane %v526_v43, 1  ;;  %v573_v15 = vrot.slane %v527_v44, 1  ;;  %v2020_v16 = vsel %vm541_vm0, 0.0, %v530_v3 }
  0x1d   : > { %v550_v17 = vsel %vm541_vm0, 0.0, %v531_v8  ;;  %v576_v21 = vrot.slane %v528_v39, 1  ;;  %v575_v22 = vrot.slane %v1977_v45, 1  ;;  %v579_v24 = vrot.slane %v1974_v40, 1 }
  0x1e   : > { %1627 = vrot.lane.b32.xlu0 %v1626_v2, %s1845_s19  ;;  %v571_v23 = vsel %vm559_vm1, %v569_v61, %v570_v14  ;;  %v1621_v25 = vpack.i.bf16 %v550_v17, %v2020_v16  ;;  %v578_v27 = vrot.slane %v1981_v46, 1  ;;  %v581_v28 = vrot.slane %v2020_v16, 1 }
  0x1f   : > { %1612 = vrot.lane.b32.xlu1 %v1611_v0, %s1844_s14  ;;  %v1631_v26 = vpack.i.bf16 %v571_v23, %v568_v11  ;;  %v574_v29 = vsel %vm559_vm1, %v572_v9, %v573_v15  ;;  %v582_v30 = vrot.slane %v530_v3, 1  ;;  %v1636_v31 = vpack.i.bf16 %v568_v11, %v565_v62 }
  0x20   : > { %v577_v32 = vsel %vm559_vm1, %v575_v22, %v576_v21  ;;  %v1641_v33 = vpack.i.bf16 %v574_v29, %v571_v23  ;;  %v633_v34 = vrot.slane %v550_v17, 1  ;;  %v634_v35 = vrot.slane %v531_v8, 1 }
  0x21   : > { %v580_v36 = vsel %vm559_vm1, %v578_v27, %v579_v24  ;;  %v583_v37 = vsel %vm559_vm1, %v581_v28, %v582_v30  ;;  %v1646_v38 = vpack.i.bf16 %v577_v32, %v574_v29 }
  0x22   : > { %1632 = vrot.lane.b32.xlu0 %v1631_v26, %s1845_s19  ;;  %v1651_v39 = vpack.i.bf16 %v583_v37, %v580_v36  ;;  %v635_v40 = vsel %vm559_vm1, %v633_v34, %v634_v35  ;;  %v1656_v41 = vpack.i.bf16 %v580_v36, %v577_v32 }
  0x23   : > { %1622 = vrot.lane.b32.xlu1 %v1621_v25, %s1844_s14  ;;  %v1661_v42 = vpack.i.bf16 %v635_v40, %v583_v37 }
  0x26   : > { %1637 = vrot.lane.b32.xlu0 %v1636_v31, %s1846_s20 }
  0x27   : > { %1642 = vrot.lane.b32.xlu1 %v1641_v33, %s1846_s20 }
  0x2a   : > { %1647 = vrot.lane.b32.xlu0 %v1646_v38, %s1845_s19 }
  0x2b   : > { %1652 = vrot.lane.b32.xlu1 %v1651_v39, %s1845_s19 }
  0x2e   : > { %1657 = vrot.lane.b32.xlu0 %v1656_v41, %s1846_s20 }
  0x2f   : > { %1662 = vrot.lane.b32.xlu1 %v1661_v42, %s1846_s20 }
  0x32   : > { %442 = vrot.lane.b32.xlu0 %v1946_v7, %s1847_s22 }
  0x33   : > { %444 = vrot.lane.b32.xlu1 %v1950_v10, %s1847_s22 }
  0x36   : > { %446 = vrot.lane.b32.xlu0 %v1953_v12, %s1847_s22 }
  0x37   : > { %448 = vrot.lane.b32.xlu1 %v1955_v13, %s1847_s22 }
  0x3a   : > { %450 = vrot.lane.b32.xlu0 %v1942_v5, %s1847_s22 }
  0x3b   : > { %452 = vrot.lane.b32.xlu1 %v1944_v6, %s1847_s22 }
  0x3e   : > { %454 = vrot.lane.b32.xlu0 %v1962_v19, %s1847_s22 }
  0x3f   : > { %456 = vrot.lane.b32.xlu1 %v1964_v20, %s1847_s22 }
  0x8c   : > { %v1618_v43 = vpop.permute.xlu0 %1617 }
  0x8d   : > { %v1608_v44 = vpop.permute.xlu1 %1607  ;;  %v1620_v36 = vunpack.i.h.bf16 %v1618_v43  ;;  %v1619_v37 = vunpack.i.l.bf16 %v1618_v43 }
  0x8e   : > { %v1610_v61 = vunpack.i.h.bf16 %v1608_v44  ;;  %v1609_v62 = vunpack.i.l.bf16 %v1608_v44 }
  0x90   : > { %v1628_v47 = vpop.permute.xlu0 %1627 }
  0x91   : > { %v1613_v48 = vpop.permute.xlu1 %1612  ;;  %v1630_v49 = vunpack.i.h.bf16 %v1628_v47  ;;  %v1629_v51 = vunpack.i.l.bf16 %v1628_v47 }
  0x92   : > { %v1615_v9 = vunpack.i.h.bf16 %v1613_v48  ;;  %v1614_v11 = vunpack.i.l.bf16 %v1613_v48 }
  0x93   : > { %v662_v57 = vsel %vm660_vm2, %v1992_v50, %v1630_v49  ;;  %v661_v58 = vsel %vm660_vm2, %v1940_v4, %v1629_v51 }
  0x94   : > { %v1633_v52 = vpop.permute.xlu0 %1632  ;;  %v670_v14 = vsel %vm669_vm3, %v661_v58, %v1609_v62  ;;  %v671_v15 = vsel %vm669_vm3, %v662_v57, %v1610_v61 }
  0x95   : > { %v1635_v54 = vunpack.i.h.bf16 %v1633_v52  ;;  %v1634_v55 = vunpack.i.l.bf16 %v1633_v52  ;;  %v1623_v56 = vpop.permute.xlu1 %1622 }
  0x96   : > { %v1625_v44 = vunpack.i.h.bf16 %v1623_v56  ;;  %v1624_v47 = vunpack.i.l.bf16 %v1623_v56 }
  0x97   : > { %v664_v0 = vsel %vm660_vm2, %v2003_v59, %v1635_v54  ;;  %v663_v2 = vsel %vm660_vm2, %v1995_v53, %v1634_v55 }
  0x98   : > { %v1638_v63 = vpop.permute.xlu0 %1637  ;;  %v672_v59 = vsel %vm669_vm3, %v663_v2, %v1614_v11  ;;  %v673_v24 = vsel %vm669_vm3, %v664_v0, %v1615_v9 }
  0x99   : > { %v1640_v3 = vunpack.i.h.bf16 %v1638_v63  ;;  %v1639_v8 = vunpack.i.l.bf16 %v1638_v63  ;;  %v1643_v50 = vpop.permute.xlu1 %1642 }
  0x9a   : > { %v1645_v17 = vunpack.i.h.bf16 %v1643_v50  ;;  %v1644_v21 = vunpack.i.l.bf16 %v1643_v50 }
  0x9b   : > { %v679_v22 = vsel %vm678_vm4, %v670_v14, %v1639_v8  ;;  %v680_v23 = vsel %vm678_vm4, %v671_v15, %v1640_v3 }
  0x9c   : > { %v1648_v53 = vpop.permute.xlu0 %1647  ;;  %v687_v25 = vpack.c.bf16 %v680_v23, %v679_v22  ;;  %v681_v26 = vsel %vm678_vm4, %v672_v59, %v1644_v21  ;;  %v682_v27 = vsel %vm678_vm4, %v673_v24, %v1645_v17  ;;  %v2113_v22 = vld [vmem:[%s2488_s4] ss:$0 sm:$0xff] }
  0x9d   : > { %v1650_v28 = vunpack.i.h.bf16 %v1648_v53  ;;  %v1649_v29 = vunpack.i.l.bf16 %v1648_v53  ;;  %v688_v30 = vpack.c.bf16 %v682_v27, %v681_v26  ;;  %v1653_v31 = vpop.permute.xlu1 %1652  ;;  %v2122_v26 = vld [vmem:[%s2489_s5] ss:$0 sm:$0xff] }
  0x9e   : > { %1560 = vmatprep.mubr.msk.bf16.mxu0 %vm730_vm5, %v687_v25  ;;  %v1655_v32 = vunpack.i.h.bf16 %v1653_v31  ;;  %v1654_v33 = vunpack.i.l.bf16 %v1653_v31 }
  0x9f   : > { %v666_v34 = vsel %vm660_vm2, %v1977_v45, %v1650_v28  ;;  %v665_v35 = vsel %vm660_vm2, %v2006_v60, %v1649_v29  ;;  %1561 = vmatmul.mubr.msk.bf16.vlgmr.msra.gmra.mxu0 %vm730_vm5, %v688_v30 }
  0xa0   : > { %v1658_v38 = vpop.permute.xlu0 %1657  ;;  %v668_v39 = vsel %vm660_vm2, %v2020_v16, %v1655_v32  ;;  %v667_v40 = vsel %vm660_vm2, %v1981_v46, %v1654_v33  ;;  %v674_v45 = vsel %vm669_vm3, %v665_v35, %v1619_v37  ;;  %v675_v60 = vsel %vm669_vm3, %v666_v34, %v1620_v36  ;;  %v2131_v34 = vld [vmem:[%s2490_s6] ss:$0 sm:$0xff] }
  0xa1   : > { %v1660_v41 = vunpack.i.h.bf16 %v1658_v38  ;;  %v1659_v42 = vunpack.i.l.bf16 %v1658_v38  ;;  %v1663_v48 = vpop.permute.xlu1 %1662  ;;  %v676_v16 = vsel %vm669_vm3, %v667_v40, %v1624_v47  ;;  %v677_v54 = vsel %vm669_vm3, %v668_v39, %v1625_v44 }
  0xa2   : > { %v1665_v49 = vunpack.i.h.bf16 %v1663_v48  ;;  %v1664_v43 = vunpack.i.l.bf16 %v1663_v48 }
  0xa3   : > { %v683_v51 = vsel %vm678_vm4, %v674_v45, %v1659_v42  ;;  %v684_v52 = vsel %vm678_vm4, %v675_v60, %v1660_v41  ;;  %v2140_v41 = vld [vmem:[%s2491_s7] ss:$0 sm:$0xff] }
  0xa4   : > { %v689_v46 = vpack.c.bf16 %v684_v52, %v683_v51  ;;  %v443_v55 = vpop.permute.xlu0 %442  ;;  %v685_v57 = vsel %vm678_vm4, %v676_v16, %v1664_v43  ;;  %v686_v56 = vsel %vm678_vm4, %v677_v54, %v1665_v49 }
  0xa5   : > { %v466_v58 = vmax.f32 %v1946_v7, %v443_v55  ;;  %v690_v61 = vpack.c.bf16 %v686_v56, %v685_v57  ;;  %v445_v62 = vpop.permute.xlu1 %444 }
  0xa6   : > { %1564 = vmatprep.mubr.msk.bf16.mxu0 %vm730_vm5, %v689_v46  ;;  %v2088_v63 = vmax.f32 %v1950_v10, %v445_v62 }
  0xa7   : > { %482 = vrot.lane.b32.xlu0 %v466_v58, %s1848_s23  ;;  %1565 = vmatmul.mubr.msk.bf16.gmra.mxu0 %vm730_vm5, %v690_v61 }
  0xa8   : > { %v447_v0 = vpop.permute.xlu0 %446  ;;  %484 = vrot.lane.b32.xlu1 %v2088_v63, %s1848_s23 }
  0xa9   : > { %v468_v2 = vmax.f32 %v1953_v12, %v447_v0  ;;  %v449_v3 = vpop.permute.xlu1 %448 }
  0xaa   : > { %v469_v8 = vmax.f32 %v1955_v13, %v449_v3 }
  0xab   : > { %486 = vrot.lane.b32.xlu0 %v468_v2, %s1848_s23 }
  0xac   : > { %v451_v7 = vpop.permute.xlu0 %450  ;;  %488 = vrot.lane.b32.xlu1 %v469_v8, %s1848_s23 }
  0xad   : > { %v2095_v9 = vmax.f32 %v1942_v5, %v451_v7  ;;  %v453_v10 = vpop.permute.xlu1 %452 }
  0xae   : > { %v2098_v11 = vmax.f32 %v1944_v6, %v453_v10  ;;  %v926_v10 = vsel %vm541_vm0, %v1924_v1, 0.0 }
  0xaf   : > { %490 = vrot.lane.b32.xlu0 %v2095_v9, %s1848_s23 }
  0xb0   : > { %v455_v50 = vpop.permute.xlu0 %454  ;;  %492 = vrot.lane.b32.xlu1 %v2098_v11, %s1848_s23 }
  0xb1   : > { %v2103_v12 = vmax.f32 %v1962_v19, %v455_v50  ;;  %v457_v14 = vpop.permute.xlu1 %456 }
  0xb2   : > { %v2106_v13 = vmax.f32 %v1964_v20, %v457_v14 }
  0xb3   : > { %494 = vrot.lane.b32.xlu0 %v2103_v12, %s1848_s23 }
  0xb4   : > { %496 = vrot.lane.b32.xlu1 %v2106_v13, %s1848_s23 }
 0x119   : > { %v483_v5 = vpop.permute.xlu0 %482 }
 0x11a   : > { %v485_v15 = vpop.permute.xlu1 %484  ;;  %v506_v19 = vmax.f32 %v466_v58, %v483_v5 }
 0x11b   : > { %v507_v30 = vmax.f32 %v2088_v63, %v485_v15 }
 0x11c   : > { %v809_v31 = vsel %vm808_vm6, %v506_v19, 0.0 }
 0x11d   : > { %v487_v6 = vpop.permute.xlu0 %486  ;;  %v810_v43 = vsel %vm808_vm6, %v507_v30, 0.0  ;;  %v999_v30 = vrot.slane %v926_v10, 2 }
 0x11e   : > { %v489_v17 = vpop.permute.xlu1 %488  ;;  %v508_v21 = vmax.f32 %v468_v2, %v487_v6 }
 0x11f   : > { %v509_v24 = vmax.f32 %v469_v8, %v489_v17 }
 0x120   : > { %v811_v53 = vsel %vm808_vm6, %v508_v21, 0.0 }
 0x121   : > { %v491_v59 = vpop.permute.xlu0 %490  ;;  %v812_v37 = vsel %vm808_vm6, %v509_v24, 0.0 }
 0x122   : > { %v2117_v25 = vpop.permute.xlu1 %492  ;;  %v510_v47 = vmax.f32 %v2095_v9, %v491_v59 }
 0x124   : > { %v813_v63 = vsel %vm808_vm6, %v510_v47, 0.0 }
 0x125   : > { %v495_v39 = vpop.permute.xlu0 %494 }
 0x126   : > { %v497_v48 = vpop.permute.xlu1 %496  ;;  %v512_v16 = vmax.f32 %v2103_v12, %v495_v39 }
 0x127   : > { %v513_v56 = vmax.f32 %v2106_v13, %v497_v48 }
 0x128   : > { %v815_v50 = vsel %vm808_vm6, %v512_v16, 0.0 }
 0x129   : > { %v816_v5 = vsel %vm808_vm6, %v513_v56, 0.0 }
 0x15f   : > { %v1562_v23 = vpop.f32.mrf.mxu0 }
 0x160   : > { %v786_v20 = vadd.f32 %v1562_v23, %v2113_v22 }
 0x161   : > { %v777_v27 = vpop.f32.mrf.mxu0 }
 0x162   : > { %v819_v28 = vadd.f32 %v811_v53, %v786_v20  ;;  %v778_v29 = vadd.f32 %v2113_v22, %v777_v27  ;;  %v950_v53 = vrot.slane %v926_v10, 1 }
 0x163   : > { %v1563_v32 = vpop.f32.mrf.mxu0 }
 0x164   : > { %vm827_vm7 = vcmp.ge.f32.partialorder %v819_v28, 0.0  ;;  %v842_v33 = vmul.f32 %v2122_v26, %v819_v28  ;;  %v817_v35 = vadd.f32 %v809_v31, %v778_v29  ;;  %v789_v36 = vadd.f32 %v1563_v32, %v2113_v22 }
 0x165   : > { %v780_v38 = vpop.f32.mrf.mxu0  ;;  %v998_v29 = vrot.slane %v1940_v4, 2 }
 0x166   : > { %v2135_v40 = vsel %vm827_vm7, %v819_v28, %v842_v33  ;;  %vm825_vm8 = vcmp.ge.f32.partialorder %v817_v35, 0.0  ;;  %v840_v42 = vmul.f32 %v2122_v26, %v817_v35  ;;  %v820_v44 = vadd.f32 %v812_v37, %v789_v36 }
 0x167   : > { %v865_v45 = vmul.f32 %v2131_v34, %v2135_v40  ;;  %v781_v60 = vadd.f32 %v2113_v22, %v780_v38  ;;  %v1566_v49 = vpop.f32.mrf.mxu0  ;;  %v2203_v48 = vsel %vm997_vm14, %v998_v29, %v999_v30  ;;  %vm1232_vm7 = vcmask 326656  }
 0x168   : > { %v2148_v51 = vsel %vm825_vm8, %v817_v35, %v840_v42  ;;  %vm828_vm9 = vcmp.ge.f32.partialorder %v820_v44, 0.0  ;;  %v843_v52 = vmul.f32 %v2122_v26, %v820_v44  ;;  %v802_v61 = vadd.f32 %v1566_v49, %v2113_v22 }
 0x169   : > { %v880_v54 = vadd.f32 %v2140_v41, %v865_v45  ;;  %v863_v46 = vmul.f32 %v2131_v34, %v2148_v51  ;;  %v818_v55 = vadd.f32 %v810_v43, %v781_v60  ;;  %v793_v57 = vpop.f32.mrf.mxu0  ;;  %v2199_v42 = vsel %vm559_vm1, %v560_v18, %v950_v53 }
 0x16a   : > { %v2156_v58 = vsel %vm828_vm9, %v820_v44, %v843_v52  ;;  %v794_v62 = vadd.f32 %v2113_v22, %v793_v57  ;;  %v823_v6 = vadd.f32 %v815_v50, %v802_v61  ;;  %vm1249_vm8 = vcmask 457728  }
 0x16b   : > { %v878_v0 = vadd.f32 %v2140_v41, %v863_v46  ;;  %v866_v2 = vmul.f32 %v2131_v34, %v2156_v58  ;;  %vm826_vm10 = vcmp.ge.f32.partialorder %v818_v55, 0.0  ;;  %v1567_v3 = vpop.f32.mrf.mxu0  ;;  %v888_v8 = vmax.f32 %v880_v54, 0.0 }
 0x16c   : > { %v841_v7 = vmul.f32 %v2122_v26, %v818_v55  ;;  %v821_v9 = vadd.f32 %v813_v63, %v794_v62  ;;  %v805_v13 = vadd.f32 %v1567_v3, %v2113_v22  ;;  %v846_v27 = vmul.f32 %v2122_v26, %v823_v6 }
 0x16d   : > { %v886_v12 = vmax.f32 %v878_v0, 0.0  ;;  %v881_v14 = vadd.f32 %v2140_v41, %v866_v2  ;;  %v904_v1 = vrot.slane %v888_v8, 7  ;;  %vm831_vm12 = vcmp.ge.f32.partialorder %v823_v6, 0.0 }
 0x16e   : > { %v2171_v15 = vsel %vm826_vm10, %v818_v55, %v841_v7  ;;  %v844_v17 = vmul.f32 %v2122_v26, %v821_v9  ;;  %vm829_vm11 = vcmp.ge.f32.partialorder %v821_v9, 0.0  ;;  %v824_v59 = vadd.f32 %v816_v5, %v805_v13 }
 0x16f   : > { %v902_v21 = vrot.slane %v886_v12, 7  ;;  %v889_v19 = vmax.f32 %v881_v14, 0.0  ;;  %v864_v23 = vmul.f32 %v2131_v34, %v2171_v15  ;;  %v2190_v37 = vsel %vm541_vm0, 0.0, %v904_v1 }
 0x170   : > { %v2178_v28 = vsel %vm829_vm11, %v821_v9, %v844_v17  ;;  %v847_v32 = vmul.f32 %v2122_v26, %v824_v59  ;;  %vm832_vm13 = vcmp.ge.f32.partialorder %v824_v59, 0.0  ;;  %v2205_v45 = vsel %vm831_vm12, %v823_v6, %v846_v27  ;;  %v796_v9 = vpop.f32.mrf.mxu0 }
 0x171   : > { %v905_v20 = vrot.slane %v889_v19, 7  ;;  %v879_v24 = vadd.f32 %v2140_v41, %v864_v23  ;;  %v2182_v31 = vsel %vm541_vm0, 0.0, %v902_v21  ;;  %v927_v35 = vsel %vm541_vm0, %v902_v21, 0.0 }
 0x172   : > { %v867_v38 = vmul.f32 %v2131_v34, %v2178_v28  ;;  %v952_v44 = vrot.slane %v2182_v31, 1  ;;  %v953_v47 = vrot.slane %v927_v35, 1  ;;  %v2207_v60 = vsel %vm832_vm13, %v824_v59, %v847_v32 }
 0x173   : > { %v2186_v33 = vsel %vm541_vm0, 0.0, %v905_v20  ;;  %v887_v36 = vmax.f32 %v879_v24, 0.0  ;;  %v929_v49 = vsel %vm541_vm0, %v904_v1, 0.0  ;;  %v930_v43 = vsel %vm541_vm0, %v905_v20, 0.0 }
 0x174   : > { %v1666_v39 = vpack.i.bf16 %v2186_v33, %v2190_v37  ;;  %v2213_v18 = vsel %vm559_vm1, %v952_v44, %v953_v47  ;;  %v958_v16 = vrot.slane %v2190_v37, 1  ;;  %v959_v54 = vrot.slane %v929_v49, 1 }
 0x175   : > { %v903_v52 = vrot.slane %v887_v36, 7  ;;  %v882_v46 = vadd.f32 %v2140_v41, %v867_v38  ;;  %v1671_v55 = vpack.i.bf16 %v2213_v18, %v2199_v42  ;;  %v961_v57 = vrot.slane %v2186_v33, 1 }
 0x176   : > { %1667 = vrot.lane.b32.xlu1 %v1666_v39, %s1849_s13  ;;  %v962_v56 = vrot.slane %v930_v43, 1  ;;  %v870_v61 = vmul.f32 %v2131_v34, %v2207_v60  ;;  %v960_v62 = vsel %vm559_vm1, %v958_v16, %v959_v54  ;;  %v1001_v63 = vrot.slane %v2182_v31, 2 }
 0x177   : > { %v1002_v0 = vrot.slane %v927_v35, 2  ;;  %1672 = vrot.lane.b32.xlu0 %v1671_v55, %s1850_s15  ;;  %v1007_v3 = vrot.slane %v2190_v37, 2  ;;  %v1008_v8 = vrot.slane %v929_v49, 2  ;;  %v1010_v7 = vrot.slane %v2186_v33, 2 }
 0x178   : > { %v2226_v2 = vsel %vm559_vm1, %v961_v57, %v962_v56  ;;  %v1011_v12 = vrot.slane %v930_v43, 2  ;;  %v2233_v14 = vsel %vm541_vm0, 0.0, %v903_v52  ;;  %v511_v5 = vmax.f32 %v2098_v11, %v2117_v25 }
 0x179   : > { %v1691_v10 = vpack.i.bf16 %v2226_v2, %v960_v62  ;;  %v1003_v50 = vsel %vm997_vm14, %v1001_v63, %v1002_v0  ;;  %v928_v17 = vsel %vm541_vm0, %v903_v52, 0.0  ;;  %v955_v21 = vrot.slane %v2233_v14, 1 }
 0x17a   : > { %v1676_v13 = vpack.i.bf16 %v1003_v50, %v2203_v48  ;;  %v2240_v6 = vsel %vm997_vm14, %v1010_v7, %v1011_v12  ;;  %v869_v19 = vmul.f32 %v2131_v34, %v2205_v45  ;;  %v797_v23 = vadd.f32 %v2113_v22, %v796_v9 }
 0x17b   : > { %1692 = vrot.lane.b32.xlu1 %v1691_v10, %s1844_s14  ;;  %v1009_v1 = vsel %vm997_vm14, %v1007_v3, %v1008_v8  ;;  %v956_v59 = vrot.slane %v928_v17, 1  ;;  %v890_v11 = vmax.f32 %v882_v46, 0.0  ;;  %v885_v25 = vadd.f32 %v2140_v41, %v870_v61  ;;  %v1831_v61 = vld [vmem:[%s2492_s8 + $0x18] sm:$0xff]  }
 0x17c   : > { %1677 = vrot.lane.b32.xlu0 %v1676_v13, %s1845_s19  ;;  %v1696_v20 = vpack.i.bf16 %v2240_v6, %v1009_v1  ;;  %v1681_v24 = vpack.i.bf16 %v2233_v14, %v2182_v31  ;;  %v1004_v27 = vrot.slane %v2233_v14, 2  ;;  %v1005_v29 = vrot.slane %v928_v17, 2  ;;  %v1833_v17 = vld [vmem:[%s2492_s8 + $0x8] sm:$0xff]  }
 0x17d   : > { %v957_v53 = vsel %vm559_vm1, %v955_v21, %v956_v59  ;;  %v814_v22 = vsel %vm808_vm6, %v511_v5, 0.0  ;;  %v884_v30 = vadd.f32 %v2140_v41, %v869_v19  ;;  %v906_v36 = vrot.slane %v890_v11, 7 }
 0x17e   : > { %v822_v32 = vadd.f32 %v814_v22, %v797_v23  ;;  %v1701_v35 = vpack.i.bf16 %v960_v62, %v957_v53  ;;  %v1686_v38 = vpack.i.bf16 %v2190_v37, %v2233_v14  ;;  %v1006_v39 = vsel %vm997_vm14, %v1004_v27, %v1005_v29 }
 0x17f   : > { %1697 = vrot.lane.b32.xlu1 %v1696_v20, %s1851_s16  ;;  %v893_v44 = vmax.f32 %v885_v25, 0.0  ;;  %v892_v47 = vmax.f32 %v884_v30, 0.0  ;;  %v1706_v43 = vpack.i.bf16 %v1009_v1, %v1006_v39  ;;  %v1711_v52 = vpack.i.bf16 %v957_v53, %v2213_v18  ;;  %v1834_v20 = vld [vmem:[%s2492_s8] sm:$0xff]  }
 0x180   : > { %1682 = vrot.lane.b32.xlu0 %v1681_v24, %s1849_s13  ;;  %v845_v49 = vmul.f32 %v2122_v26, %v822_v32  ;;  %vm830_vm15 = vcmp.ge.f32.partialorder %v822_v32, 0.0  ;;  %v2267_v16 = vsel %vm541_vm0, 0.0, %v906_v36  ;;  %v1830_v26 = vld [vmem:[%s2492_s8 + $0x20] ss:$0 sps:$4 sm:$0xff]   ;;  %v1716_v56 = vpack.i.bf16 %v1006_v39, %v1003_v50 }
 0x181   : > { %v909_v54 = vrot.slane %v893_v44, 7  ;;  %v908_v46 = vrot.slane %v892_v47, 7  ;;  %v1731_v57 = vpack.i.bf16 %v2267_v16, %v2186_v33  ;;  %vm1326_vm6 = vcmask 1043456  }
 0x182   : > { %v2270_v55 = vsel %vm830_vm15, %v822_v32, %v845_v49  ;;  %v931_v63 = vsel %vm541_vm0, %v906_v36, 0.0  ;;  %1586 = vmatprep.subr.msk.bf16.mxu1 %vm1326_vm6, %v1830_v26  ;;  %v1328_v3 = vsel %vm1326_vm6, %v1830_v26, 0  ;;  %v964_v7 = vrot.slane %v2267_v16, 1 }
 0x183   : > { %1702 = vrot.lane.b32.xlu1 %v1701_v35, %s1850_s15  ;;  %v2279_v18 = vsel %vm541_vm0, 0.0, %v909_v54  ;;  %v868_v62 = vmul.f32 %v2131_v34, %v2270_v55  ;;  %v2290_v0 = vsel %vm541_vm0, 0.0, %v908_v46  ;;  %1569 = vmatpush3.bf16.msra.mxu1 %v1328_v3  ;;  %v965_v9 = vrot.slane %v931_v63, 1  ;;  %v1832_v34 = vld [vmem:[%s2492_s8 + $0x10] sm:$0xff]  }
 0x184   : > { %1687 = vrot.lane.b32.xlu0 %v1686_v38, %s1846_s20  ;;  %v1736_v8 = vpack.i.bf16 %v2279_v18, %v2290_v0  ;;  %1570 = vmatprep.subr.bf16.mxu1 %v1831_v61  ;;  %v1013_v50 = vrot.slane %v2267_v16, 2  ;;  %v1014_v12 = vrot.slane %v931_v63, 2  ;;  %v1741_v13 = vpack.i.bf16 %v1940_v4, %v2279_v18 }
 0x185   : > { %v883_v10 = vadd.f32 %v2140_v41, %v868_v62  ;;  %v966_v5 = vsel %vm559_vm1, %v964_v7, %v965_v9  ;;  %v934_v19 = vsel %vm541_vm0, %v909_v54, 0.0  ;;  %v933_v1 = vsel %vm541_vm0, %v908_v46, 0.0 }
 0x186   : > { %v1015_v21 = vsel %vm997_vm14, %v1013_v50, %v1014_v12  ;;  %v1746_v23 = vpack.i.bf16 %v966_v5, %v2226_v2  ;;  %v1072_v11 = vrot.slane %v2279_v18, 1  ;;  %v1073_v25 = vrot.slane %v934_v19, 1 }
 0x187   : > { %1707 = vrot.lane.b32.xlu1 %v1706_v43, %s1845_s19  ;;  %1571 = vmatpush3.bf16.msra.mxu1 %v1831_v61  ;;  %v891_v41 = vmax.f32 %v883_v10, 0.0  ;;  %v1756_v59 = vpack.i.bf16 %v1015_v21, %v2240_v6  ;;  %v970_v2 = vrot.slane %v2290_v0, 1  ;;  %v971_v53 = vrot.slane %v933_v1, 1 }
 0x188   : > { %1712 = vrot.lane.b32.xlu0 %v1711_v52, %s1844_s14  ;;  %1572 = vmatprep.subr.bf16.mxu1 %v1832_v34  ;;  %v1074_v27 = vsel %vm559_vm1, %v1072_v11, %v1073_v25  ;;  %v1099_v6 = vrot.slane %v2279_v18, 2  ;;  %v1100_v29 = vrot.slane %v934_v19, 2  ;;  %v1020_v36 = vrot.slane %v933_v1, 2 }
 0x189   : > { %v907_v24 = vrot.slane %v891_v41, 7  ;;  %v972_v32 = vsel %vm559_vm1, %v970_v2, %v971_v53  ;;  %v1796_v3 = vpack.i.bf16 %v2199_v42, %v1074_v27  ;;  %vm1313_vm9 = vcmask 588800  }
 0x18a   : > { %v1776_v38 = vpack.i.bf16 %v1074_v27, %v972_v32  ;;  %v1101_v44 = vsel %vm997_vm14, %v1099_v6, %v1100_v29 }
 0x18b   : > { %1732 = vrot.lane.b32.xlu1 %v1731_v57, %s1846_s20  ;;  %1573 = vmatpush3.bf16.msra.mxu1 %v1832_v34  ;;  %v2326_v22 = vsel %vm541_vm0, 0.0, %v907_v24  ;;  %v932_v30 = vsel %vm541_vm0, %v907_v24, 0.0  ;;  %vm1198_vm0 = vcmask 64512  }
 0x18c   : > { %1717 = vrot.lane.b32.xlu0 %v1716_v56, %s1851_s16  ;;  %1574 = vmatprep.subr.bf16.mxu1 %v1833_v17  ;;  %v1766_v39 = vpack.i.bf16 %v2326_v22, %v2267_v16  ;;  %v967_v47 = vrot.slane %v2326_v22, 1  ;;  %v968_v49 = vrot.slane %v932_v30, 1  ;;  %v1771_v54 = vpack.i.bf16 %v2290_v0, %v2326_v22 }
 0x18d   : > { %v1016_v26 = vrot.slane %v2326_v22, 2  ;;  %v1017_v57 = vrot.slane %v932_v30, 2 }
 0x18e   : > { %v969_v46 = vsel %vm559_vm1, %v967_v47, %v968_v49  ;;  %vm1215_vm1 = vcmask 195584  }
 0x18f   : > { %1737 = vrot.lane.b32.xlu1 %v1736_v8, %s1849_s13  ;;  %1575 = vmatpush3.bf16.msra.mxu1 %v1833_v17  ;;  %v1786_v56 = vpack.i.bf16 %v972_v32, %v969_v46  ;;  %v1801_v18 = vpack.i.bf16 %v969_v46, %v966_v5  ;;  %v1018_v61 = vsel %vm997_vm14, %v1016_v26, %v1017_v57 }
 0x190   : > { %1722 = vrot.lane.b32.xlu0 %v1701_v35, %s1852_s28  ;;  %1576 = vmatprep.subr.bf16.mxu1 %v1834_v20  ;;  %v1019_v35 = vrot.slane %v2290_v0, 2  ;;  %v1806_v63 = vpack.i.bf16 %v1018_v61, %v1015_v21  ;;  %v1821_v8 = vpack.i.bf16 %v2203_v48, %v1101_v44 }
 0x193   : > { %1742 = vrot.lane.b32.xlu1 %v1741_v13, %s1846_s20  ;;  %1577 = vmatpush3.bf16.msra.mxu1 %v1834_v20 }
 0x194   : > { %1727 = vrot.lane.b32.xlu0 %v1706_v43, %s1853_s12  ;;  %v1021_v43 = vsel %vm997_vm14, %v1019_v35, %v1020_v36 }
 0x195   : > { %v1781_v52 = vpack.i.bf16 %v1101_v44, %v1021_v43  ;;  %v1791_v62 = vpack.i.bf16 %v1021_v43, %v1018_v61 }
 0x197   : > { %1747 = vrot.lane.b32.xlu1 %v1746_v23, %s1852_s28 }
 0x198   : > { %1757 = vrot.lane.b32.xlu0 %v1756_v59, %s1853_s12 }
 0x19b   : > { %1752 = vrot.lane.b32.xlu1 %v1746_v23, %s1850_s15 }
 0x19c   : > { %1762 = vrot.lane.b32.xlu0 %v1756_v59, %s1845_s19 }
 0x19f   : > { %1777 = vrot.lane.b32.xlu1 %v1776_v38, %s1844_s14 }
 0x1a0   : > { %1767 = vrot.lane.b32.xlu0 %v1766_v39, %s1849_s13 }
 0x1a3   : > { %1782 = vrot.lane.b32.xlu1 %v1781_v52, %s1851_s16 }
 0x1a4   : > { %1772 = vrot.lane.b32.xlu0 %v1771_v54, %s1846_s20 }
 0x1a7   : > { %1787 = vrot.lane.b32.xlu1 %v1786_v56, %s1850_s15 }
 0x1a8   : > { %1802 = vrot.lane.b32.xlu0 %v1801_v18, %s1844_s14 }
 0x1ab   : > { %1792 = vrot.lane.b32.xlu1 %v1791_v62, %s1845_s19 }
 0x1ac   : > { %1807 = vrot.lane.b32.xlu0 %v1806_v63, %s1851_s16 }
 0x1af   : > { %1797 = vrot.lane.b32.xlu1 %v1796_v3, %s1852_s28 }
 0x1b0   : > { %1812 = vrot.lane.b32.xlu0 %v1786_v56, %s1852_s28 }
 0x1b3   : > { %1822 = vrot.lane.b32.xlu1 %v1821_v8, %s1853_s12 }
 0x1b4   : > { %1817 = vrot.lane.b32.xlu0 %v1791_v62, %s1853_s12 }
 0x1e8   : > { %v1668_v7 = vpop.permute.xlu1 %1667 }
 0x1e9   : > { %v1673_v9 = vpop.permute.xlu0 %1672  ;;  %v1670_v59 = vunpack.i.h.bf16 %v1668_v7  ;;  %v1669_v11 = vunpack.i.l.bf16 %v1668_v7 }
 0x1ea   : > { %v1675_v48 = vunpack.i.h.bf16 %v1673_v9  ;;  %v1674_v1 = vunpack.i.l.bf16 %v1673_v9 }
 0x1ec   : > { %v1200_v38 = vsel %vm1198_vm0, %v2182_v31, %v1675_v48  ;;  %v1199_v39 = vsel %vm1198_vm0, %v1940_v4, %v1674_v1 }
 0x1ed   : > { %v1693_v34 = vpop.permute.xlu1 %1692 }
 0x1ee   : > { %v1678_v10 = vpop.permute.xlu0 %1677  ;;  %v1695_v4 = vunpack.i.h.bf16 %v1693_v34  ;;  %v1694_v26 = vunpack.i.l.bf16 %v1693_v34 }
 0x1ef   : > { %v1680_v25 = vunpack.i.h.bf16 %v1678_v10  ;;  %v1679_v20 = vunpack.i.l.bf16 %v1678_v10 }
 0x1f1   : > { %v2356_v50 = vpop.permute.xlu1 %1697  ;;  %v1208_v49 = vsel %vm660_vm2, %v1200_v38, %v1680_v25 }
 0x1f2   : > { %v1683_v12 = vpop.permute.xlu0 %1682  ;;  %v1700_v34 = vunpack.i.h.bf16 %v2356_v50 }
 0x1f3   : > { %v1685_v2 = vunpack.i.h.bf16 %v1683_v12  ;;  %v1684_v53 = vunpack.i.l.bf16 %v1683_v12  ;;  %v1699_v12 = vunpack.i.l.bf16 %v2356_v50 }
 0x1f5   : > { %v1703_v13 = vpop.permute.xlu1 %1702  ;;  %v1217_v52 = vsel %vm1215_vm1, %v1208_v49, %v1685_v2 }
 0x1f6   : > { %v1688_v5 = vpop.permute.xlu0 %1687  ;;  %v1705_v17 = vunpack.i.h.bf16 %v1703_v13  ;;  %v1704_v41 = vunpack.i.l.bf16 %v1703_v13 }
 0x1f7   : > { %v1690_v3 = vunpack.i.h.bf16 %v1688_v5  ;;  %v1689_v8 = vunpack.i.l.bf16 %v1688_v5 }
 0x1f8   : > { %v1202_v27 = vsel %vm1198_vm0, %v2190_v37, %v1705_v17  ;;  %v1201_v6 = vsel %vm1198_vm0, %v2233_v14, %v1704_v41  ;;  %v1207_v37 = vsel %vm660_vm2, %v1199_v39, %v1679_v20 }
 0x1f9   : > { %v1708_v42 = vpop.permute.xlu1 %1707  ;;  %v1216_v43 = vsel %vm1215_vm1, %v1207_v37, %v1684_v53 }
 0x1fa   : > { %v1713_v21 = vpop.permute.xlu0 %1712  ;;  %v1710_v19 = vunpack.i.h.bf16 %v1708_v42  ;;  %v1709_v23 = vunpack.i.l.bf16 %v1708_v42 }
 0x1fb   : > { %v1715_v35 = vunpack.i.h.bf16 %v1713_v21  ;;  %v1714_v36 = vunpack.i.l.bf16 %v1713_v21 }
 0x1fc   : > { %v1209_v30 = vsel %vm660_vm2, %v1201_v6, %v1709_v23  ;;  %v1210_v32 = vsel %vm660_vm2, %v1202_v27, %v1710_v19 }
 0x1fd   : > { %v1733_v24 = vpop.permute.xlu1 %1732  ;;  %v1218_v54 = vsel %vm1215_vm1, %v1209_v30, %v1669_v11  ;;  %v1219_v31 = vsel %vm1215_vm1, %v1210_v32, %v1670_v59  ;;  %v1224_v57 = vsel %vm669_vm3, %v1216_v43, %v1714_v36  ;;  %v1225_v56 = vsel %vm669_vm3, %v1217_v52, %v1715_v35 }
 0x1fe   : > { %v1718_v29 = vpop.permute.xlu0 %1717  ;;  %v1226_v7 = vsel %vm669_vm3, %v1218_v54, %v1694_v26  ;;  %v1227_v9 = vsel %vm669_vm3, %v1219_v31, %v1695_v4  ;;  %v1735_v13 = vunpack.i.h.bf16 %v1733_v24  ;;  %v1734_v42 = vunpack.i.l.bf16 %v1733_v24 }
 0x1ff   : > { %v1720_v44 = vunpack.i.h.bf16 %v1718_v29  ;;  %v1719_v47 = vunpack.i.l.bf16 %v1718_v29  ;;  %v1235_v5 = vsel %vm1232_vm7, %v1226_v7, %v1699_v12  ;;  %v1236_v48 = vsel %vm1232_vm7, %v1227_v9, %v1700_v34 }
 0x200   : > { %v1243_v27 = vsel %vm678_vm4, %v1235_v5, %v1734_v42  ;;  %v1244_v6 = vsel %vm678_vm4, %v1236_v48, %v1735_v13 }
 0x201   : > { %v2370_v14 = vpop.permute.xlu1 %1737  ;;  %v1233_v18 = vsel %vm1232_vm7, %v1224_v57, %v1719_v47  ;;  %v1234_v61 = vsel %vm1232_vm7, %v1225_v56, %v1720_v44 }
 0x202   : > { %v1723_v46 = vpop.permute.xlu0 %1722  ;;  %v1241_v19 = vsel %vm678_vm4, %v1233_v18, %v1689_v8  ;;  %v1242_v23 = vsel %vm678_vm4, %v1234_v61, %v1690_v3 }
 0x203   : > { %v1725_v62 = vunpack.i.h.bf16 %v1723_v46  ;;  %v1724_v63 = vunpack.i.l.bf16 %v1723_v46 }
 0x205   : > { %v2382_v10 = vpop.permute.xlu1 %1742  ;;  %v1250_v1 = vsel %vm1249_vm8, %v1241_v19, %v1724_v63  ;;  %v1251_v59 = vsel %vm1249_vm8, %v1242_v23, %v1725_v62  ;;  %v1740_v62 = vunpack.i.h.bf16 %v2370_v14  ;;  %v1739_v63 = vunpack.i.l.bf16 %v2370_v14 }
 0x206   : > { %v1728_v17 = vpop.permute.xlu0 %1727  ;;  %v1745_v8 = vunpack.i.h.bf16 %v2382_v10  ;;  %v1744_v7 = vunpack.i.l.bf16 %v2382_v10 }
 0x207   : > { %v1730_v41 = vunpack.i.h.bf16 %v1728_v17  ;;  %v1729_v21 = vunpack.i.l.bf16 %v1728_v17 }
 0x209   : > { %v1748_v11 = vpop.permute.xlu1 %1747  ;;  %v1258_v50 = vsel %vm730_vm5, %v1250_v1, %v1729_v21  ;;  %v1259_v25 = vsel %vm730_vm5, %v1251_v59, %v1730_v41 }
 0x20a   : > { %v1750_v20 = vunpack.i.h.bf16 %v1748_v11  ;;  %v1749_v24 = vunpack.i.l.bf16 %v1748_v11  ;;  %v1758_v2 = vpop.permute.xlu0 %1757  ;;  %v1266_v53 = vpack.c.bf16 %v1259_v25, %v1258_v50 }
 0x20b   : > { %v1760_v29 = vunpack.i.h.bf16 %v1758_v2  ;;  %v1759_v30 = vunpack.i.l.bf16 %v1758_v2 }
 0x20c   : > { %v1252_v32 = vsel %vm1249_vm8, %v1243_v27, %v1749_v24  ;;  %v1253_v35 = vsel %vm1249_vm8, %v1244_v6, %v1750_v20  ;;  %1578 = vmatprep.mubr.msk.bf16.mxu1 %vm1313_vm9, %v1266_v53 }
 0x20d   : > { %v1261_v36 = vsel %vm730_vm5, %v1253_v35, %v1760_v29  ;;  %v1260_v38 = vsel %vm730_vm5, %v1252_v32, %v1759_v30  ;;  %v1753_v39 = vpop.permute.xlu1 %1752 }
 0x20e   : > { %v1267_v44 = vpack.c.bf16 %v1261_v36, %v1260_v38  ;;  %v1763_v47 = vpop.permute.xlu0 %1762  ;;  %v1755_v43 = vunpack.i.h.bf16 %v1753_v39  ;;  %v1754_v52 = vunpack.i.l.bf16 %v1753_v39 }
 0x20f   : > { %v1765_v46 = vunpack.i.h.bf16 %v1763_v47  ;;  %v1764_v4 = vunpack.i.l.bf16 %v1763_v47 }
 0x210   : > { %1579 = vmatmul.mubr.msk.bf16.vlgmr.msra.gmra.mxu1 %vm1313_vm9, %v1267_v44  ;;  %v1204_v26 = vsel %vm1198_vm0, %v2267_v16, %v1755_v43  ;;  %v1203_v57 = vsel %vm1198_vm0, %v2186_v33, %v1754_v52 }
 0x211   : > { %v1778_v37 = vpop.permute.xlu1 %1777  ;;  %v1212_v12 = vsel %vm660_vm2, %v1204_v26, %v1765_v46  ;;  %v1211_v16 = vsel %vm660_vm2, %v1203_v57, %v1764_v4 }
 0x212   : > { %v1768_v49 = vpop.permute.xlu0 %1767  ;;  %v1780_v13 = vunpack.i.h.bf16 %v1778_v37  ;;  %v1779_v33 = vunpack.i.l.bf16 %v1778_v37 }
 0x213   : > { %v1770_v56 = vunpack.i.h.bf16 %v1768_v49  ;;  %v1769_v18 = vunpack.i.l.bf16 %v1768_v49 }
 0x215   : > { %v1783_v54 = vpop.permute.xlu1 %1782  ;;  %v1220_v42 = vsel %vm1215_vm1, %v1211_v16, %v1769_v18  ;;  %v1221_v17 = vsel %vm1215_vm1, %v1212_v12, %v1770_v56 }
 0x216   : > { %v1773_v31 = vpop.permute.xlu0 %1772  ;;  %v1785_v19 = vunpack.i.h.bf16 %v1783_v54  ;;  %v1784_v23 = vunpack.i.l.bf16 %v1783_v54 }
 0x217   : > { %v1775_v25 = vunpack.i.h.bf16 %v1773_v31  ;;  %v1774_v20 = vunpack.i.l.bf16 %v1773_v31 }
 0x219   : > { %v1788_v61 = vpop.permute.xlu1 %1787 }
 0x21a   : > { %v1803_v3 = vpop.permute.xlu0 %1802  ;;  %v1790_v9 = vunpack.i.h.bf16 %v1788_v61  ;;  %v1789_v34 = vunpack.i.l.bf16 %v1788_v61 }
 0x21b   : > { %v1805_v41 = vunpack.i.h.bf16 %v1803_v3  ;;  %v1804_v21 = vunpack.i.l.bf16 %v1803_v3 }
 0x21c   : > { %v1206_v1 = vsel %vm1198_vm0, %v2290_v0, %v1790_v9  ;;  %v1205_v59 = vsel %vm1198_vm0, %v2326_v22, %v1789_v34 }
 0x21d   : > { %v1793_v14 = vpop.permute.xlu1 %1792  ;;  %v1228_v53 = vsel %vm669_vm3, %v1220_v42, %v1804_v21  ;;  %v1229_v27 = vsel %vm669_vm3, %v1221_v17, %v1805_v41  ;;  %v1530_v17 = vld [vmem:[%s2494_s10] ss:$0 sm:$0xff] }
 0x21e   : > { %v1795_v5 = vunpack.i.h.bf16 %v1793_v14  ;;  %v1794_v48 = vunpack.i.l.bf16 %v1793_v14  ;;  %v1808_v10 = vpop.permute.xlu0 %1807 }
 0x21f   : > { %v1810_v11 = vunpack.i.h.bf16 %v1808_v10  ;;  %v1809_v50 = vunpack.i.l.bf16 %v1808_v10 }
 0x220   : > { %v1213_v24 = vsel %vm660_vm2, %v1205_v59, %v1794_v48  ;;  %v1214_v2 = vsel %vm660_vm2, %v1206_v1, %v1795_v5 }
 0x221   : > { %v1222_v6 = vsel %vm1215_vm1, %v1213_v24, %v1739_v63  ;;  %v1223_v29 = vsel %vm1215_vm1, %v1214_v2, %v1740_v62  ;;  %v1798_v0 = vpop.permute.xlu1 %1797  ;;  %v1237_v32 = vsel %vm1232_vm7, %v1228_v53, %v1809_v50  ;;  %v1238_v35 = vsel %vm1232_vm7, %v1229_v27, %v1810_v11 }
 0x222   : > { %v1230_v30 = vsel %vm669_vm3, %v1222_v6, %v1779_v33  ;;  %v1231_v22 = vsel %vm669_vm3, %v1223_v29, %v1780_v13  ;;  %v1813_v36 = vpop.permute.xlu0 %1812  ;;  %v1800_v38 = vunpack.i.h.bf16 %v1798_v0  ;;  %v1799_v39 = vunpack.i.l.bf16 %v1798_v0  ;;  %v1520_v13 = vld [vmem:[%s2493_s9] ss:$0 sm:$0xff] }
 0x223   : > { %v1239_v44 = vsel %vm1232_vm7, %v1230_v30, %v1784_v23  ;;  %v1240_v47 = vsel %vm1232_vm7, %v1231_v22, %v1785_v19  ;;  %v1815_v43 = vunpack.i.h.bf16 %v1813_v36  ;;  %v1814_v52 = vunpack.i.l.bf16 %v1813_v36 }
 0x224   : > { %v1247_v37 = vsel %vm678_vm4, %v1239_v44, %v1744_v7  ;;  %v1248_v49 = vsel %vm678_vm4, %v1240_v47, %v1745_v8  ;;  %v1245_v31 = vsel %vm678_vm4, %v1237_v32, %v1774_v20  ;;  %v1246_v46 = vsel %vm678_vm4, %v1238_v35, %v1775_v25 }
 0x225   : > { %v1823_v54 = vpop.permute.xlu1 %1822  ;;  %v1256_v56 = vsel %vm1249_vm8, %v1247_v37, %v1799_v39  ;;  %v1257_v18 = vsel %vm1249_vm8, %v1248_v49, %v1800_v38  ;;  %v1254_v63 = vsel %vm1249_vm8, %v1245_v31, %v1814_v52  ;;  %v1255_v3 = vsel %vm1249_vm8, %v1246_v46, %v1815_v43 }
 0x226   : > { %v1825_v4 = vunpack.i.h.bf16 %v1823_v54  ;;  %v1824_v26 = vunpack.i.l.bf16 %v1823_v54  ;;  %v1818_v57 = vpop.permute.xlu0 %1817 }
 0x227   : > { %v1820_v61 = vunpack.i.h.bf16 %v1818_v57  ;;  %v1819_v62 = vunpack.i.l.bf16 %v1818_v57 }
 0x228   : > { %v1264_v8 = vsel %vm730_vm5, %v1256_v56, %v1824_v26  ;;  %v1265_v7 = vsel %vm730_vm5, %v1257_v18, %v1825_v4 }
 0x229   : > { %v1262_v9 = vsel %vm730_vm5, %v1254_v63, %v1819_v62  ;;  %v1263_v34 = vsel %vm730_vm5, %v1255_v3, %v1820_v61  ;;  %v1269_v16 = vpack.c.bf16 %v1265_v7, %v1264_v8 }
 0x22a   : > { %v1268_v12 = vpack.c.bf16 %v1263_v34, %v1262_v9 }
 0x22c   : > { %1582 = vmatprep.mubr.msk.bf16.mxu1 %vm1313_vm9, %v1268_v12 }
 0x22d   : > { %1583 = vmatmul.mubr.msk.bf16.gmra.mxu1 %vm1313_vm9, %v1269_v16 }
 0x2d0   : > { %v1580_v33 = vpop.f32.mrf.mxu1 }
 0x2d1   : > { %v1373_v42 = vadd.f32 %v1580_v33, %v1520_v13 }
 0x2d2   : > { %v1364_v41 = vpop.f32.mrf.mxu1 }
 0x2d3   : > { %v1397_v21 = vadd.f32 %v1373_v42, %v2135_v40  ;;  %v1365_v14 = vadd.f32 %v1520_v13, %v1364_v41 }
 0x2d4   : > { %v1581_v19 = vpop.f32.mrf.mxu1 }
 0x2d5   : > { %vm1405_vm2 = vcmp.ge.f32.partialorder %v1397_v21, 0.0  ;;  %v1420_v23 = vmul.f32 %v1530_v17, %v1397_v21  ;;  %v1395_v5 = vadd.f32 %v1365_v14, %v2148_v51  ;;  %v1376_v48 = vadd.f32 %v1581_v19, %v1520_v13 }
 0x2d6   : > { %v1367_v10 = vpop.f32.mrf.mxu1 }
 0x2d7   : > { %v1428_v1 = vsel %vm1405_vm2, %v1397_v21, %v1420_v23  ;;  %vm1403_vm3 = vcmp.ge.f32.partialorder %v1395_v5, 0.0  ;;  %v1418_v40 = vmul.f32 %v1530_v17, %v1395_v5  ;;  %v1398_v59 = vadd.f32 %v1376_v48, %v2156_v58 }
 0x2d8   : > { %1436 = vst.msk [vmem:[%s2456_s24 + $0x10] sm:$0xff] %vm1198_vm0, %v1428_v1  ;;  %v1368_v11 = vadd.f32 %v1520_v13, %v1367_v10 }
 0x2d9   : > { %v1426_v50 = vsel %vm1403_vm3, %v1395_v5, %v1418_v40  ;;  %vm1406_vm4 = vcmp.ge.f32.partialorder %v1398_v59, 0.0  ;;  %v1421_v25 = vmul.f32 %v1530_v17, %v1398_v59 }
 0x2da   : > { %1434 = vst.msk [vmem:[%s2456_s24] sm:$0xff] %vm1198_vm0, %v1426_v50  ;;  %v1396_v20 = vadd.f32 %v1368_v11, %v2171_v15 }
 0x2db   : > { %v1429_v24 = vsel %vm1406_vm4, %v1398_v59, %v1421_v25 }
 0x2dc   : > { %1437 = vst.msk [vmem:[%s2456_s24 + $0x18] sm:$0xff] %vm1198_vm0, %v1429_v24  ;;  %vm1404_vm5 = vcmp.ge.f32.partialorder %v1396_v20, 0.0  ;;  %v1419_v51 = vmul.f32 %v1530_v17, %v1396_v20 }
 0x2de   : > { %v1427_v2 = vsel %vm1404_vm5, %v1396_v20, %v1419_v51 }
 0x2df   : > { %1435 = vst.msk [vmem:[%s2456_s24 + $0x8] sm:$0xff] %vm1198_vm0, %v1427_v2 }
 0x2ed   : > { %v1584_v58 = vpop.f32.mrf.mxu1 }
 0x2ee   : > { %v1389_v53 = vadd.f32 %v1584_v58, %v1520_v13 }
 0x2ef   : > { %v1380_v27 = vpop.f32.mrf.mxu1 }
 0x2f0   : > { %v1401_v6 = vadd.f32 %v1389_v53, %v2205_v45  ;;  %v1381_v29 = vadd.f32 %v1520_v13, %v1380_v27 }
 0x2f1   : > { %v1585_v0 = vpop.f32.mrf.mxu1 }
 0x2f2   : > { %vm1409_vm10 = vcmp.ge.f32.partialorder %v1401_v6, 0.0  ;;  %v1424_v30 = vmul.f32 %v1530_v17, %v1401_v6  ;;  %v1399_v15 = vadd.f32 %v1381_v29, %v2178_v28  ;;  %v1392_v22 = vadd.f32 %v1585_v0, %v1520_v13 }
 0x2f3   : > { %v1383_v32 = vpop.f32.mrf.mxu1 }
 0x2f4   : > { %v1432_v35 = vsel %vm1409_vm10, %v1401_v6, %v1424_v30  ;;  %vm1407_vm11 = vcmp.ge.f32.partialorder %v1399_v15, 0.0  ;;  %v1422_v36 = vmul.f32 %v1530_v17, %v1399_v15  ;;  %v1402_v38 = vadd.f32 %v1392_v22, %v2207_v60 }
 0x2f5   : > { %1440 = vst.msk [vmem:[%s2456_s24 + $0x30] sm:$0xff] %vm1198_vm0, %v1432_v35  ;;  %v1384_v39 = vadd.f32 %v1520_v13, %v1383_v32 }
 0x2f6   : > { %v1430_v45 = vsel %vm1407_vm11, %v1399_v15, %v1422_v36  ;;  %vm1410_vm12 = vcmp.ge.f32.partialorder %v1402_v38, 0.0  ;;  %v1425_v44 = vmul.f32 %v1530_v17, %v1402_v38 }
 0x2f7   : > { %1438 = vst.msk [vmem:[%s2456_s24 + $0x20] sm:$0xff] %vm1198_vm0, %v1430_v45  ;;  %v1400_v47 = vadd.f32 %v1384_v39, %v2270_v55 }
 0x2f8   : > { %v1433_v37 = vsel %vm1410_vm12, %v1402_v38, %v1425_v44 }
 0x2f9   : > { %1441 = vst.msk [vmem:[%s2456_s24 + $0x38] sm:$0xff] %vm1198_vm0, %v1433_v37  ;;  %vm1408_vm13 = vcmp.ge.f32.partialorder %v1400_v47, 0.0  ;;  %v1423_v28 = vmul.f32 %v1530_v17, %v1400_v47 }
 0x2fb   : > { %v1431_v49 = vsel %vm1408_vm13, %v1400_v47, %v1423_v28 }
 0x2fc   : > { %1439 = vst.msk [vmem:[%s2456_s24 + $0x28] sm:$0xff] %vm1198_vm0, %v1431_v49 }
 0x2fd PF: > { %s21_s17 = sadd.s32 1, %s1841_s17  }
 0x2fe   : > { %p18_p4 = scmp.ge.s32.totalorder %s21_s17, 4  }
 0x300   :  { %20 = sbr.rel (!%p18_p4) target bundleno = 1 (0x1), region = 94 }

</bundles_post_ra>
